<compile_context>
chip_gen: v6e
topology: v6e:2x2x1
jax: 0.10.0
libtpu: 0.0.40
codegen_flags: <defaults>
</compile_context>

<pallas_src>
import jax
import jax.numpy as jnp
from jax.experimental import pallas as pl
from jax.experimental.pallas import tpu as pltpu

# ----------------------------- config (small) --------------------------------
BATCH = 2
SEQ = 8
TOKENS = BATCH * SEQ
HIDDEN = 32
HEADS = 2
HEAD_DIM = HIDDEN // HEADS
INTERMEDIATE = 64
VOCAB = 100
MAX_POS = 16
LAYERS = 2
NUM_LABELS = 3
CLS_PAD = 128            # lane-dense padding of the classifier output
LN_EPS = 1e-12
LEAKY_SLOPE = 0.1

# Row layout of the packed "vecs" (NVEC, 128) array of tiny vectors.
ROW_EMB_G, ROW_EMB_B, ROW_POOL_B, ROW_CLS_B = 0, 1, 2, 3
ROW_LAYER0 = 4
ROWS_PER_LAYER = 8
(V_BQKV, V_BO, V_LN1G, V_LN1B, V_BI, V_BO2, V_LN2G, V_LN2B) = range(8)
NVEC = ROW_LAYER0 + LAYERS * ROWS_PER_LAYER


# ------------------------------ fused kernel ----------------------------------
def _fused_kernel(ids_ref, word_ref, pos_type_ref, bias_ref, vecs_ref,
                  w_a_ref, w_b_ref, w_head_ref, out_ref, emb_scratch):
    scale = 1.0 / (HEAD_DIM ** 0.5)

    def vec(row, width):                      # one packed (1, width) vector
        return vecs_ref[row:row + 1, :width]

    def ln(x, g_row, b_row):
        mu = jnp.mean(x, axis=-1, keepdims=True)
        var = jnp.mean((x - mu) ** 2, axis=-1, keepdims=True)
        return ((x - mu) * jax.lax.rsqrt(var + LN_EPS) * vec(g_row, HIDDEN)
                + vec(b_row, HIDDEN))

    def gelu(x):
        # TODO(synk): tanh-approximate GELU (HF MiniLM uses exact erf GELU).
        return 0.5 * x * (1.0 + jnp.tanh(0.7978845608028654
                                         * (x + 0.044715 * x * x * x)))

    # --- in-kernel embedding gather (token ids live in SMEM via prefetch) ---
    for i in range(TOKENS):
        tok = ids_ref[i]
        emb_scratch[i:i + 1, :] = word_ref[pl.ds(tok, 1), :]
    hidden = ln(emb_scratch[...] + pos_type_ref[...], ROW_EMB_G, ROW_EMB_B)

    bias2d = bias_ref[...]                    # (T, T) block-diagonal additive bias

    for li in range(LAYERS):                  # unrolled (LAYERS = 2)
        base = ROW_LAYER0 + li * ROWS_PER_LAYER
        w_a = w_a_ref[li]                     # (D, 3D | D | I) packed
        wqkv = w_a[:, :3 * HIDDEN]
        wo = w_a[:, 3 * HIDDEN:4 * HIDDEN]
        wi = w_a[:, 4 * HIDDEN:4 * HIDDEN + INTERMEDIATE]
        wo2 = w_b_ref[li]                     # (I, D)

        # Fused QKV projection: one (T, D) x (D, 3D) matmul.
        qkv = (jnp.dot(hidden, wqkv, preferred_element_type=jnp.float32)
               + vec(base + V_BQKV, 3 * HIDDEN))
        q = qkv[:, :HIDDEN]
        k = qkv[:, HIDDEN:2 * HIDDEN]
        v = qkv[:, 2 * HIDDEN:]

        attn_out = jnp.zeros((TOKENS, HIDDEN), jnp.float32)
        for h in range(HEADS):
            c0, c1 = h * HEAD_DIM, (h + 1) * HEAD_DIM
            qh, kh, vh = q[:, c0:c1], k[:, c0:c1], v[:, c0:c1]
            # Contract the last axis of both operands -> no kh.T transpose.
            s = jax.lax.dot_general(qh, kh, (((1,), (1,)), ((), ())),
                                    preferred_element_type=jnp.float32)
            s = s * scale + bias2d            # block-diag masks cross-batch keys
            m = jnp.max(s, axis=-1, keepdims=True)   # kept for robustness
            p = jnp.exp(s - m)
            p = p * pl.reciprocal(jnp.sum(p, axis=-1, keepdims=True),
                                  approx=True)
            ctx = jnp.dot(p, vh, preferred_element_type=jnp.float32)
            # Fold the output projection per head: concat(ctx_h) @ Wo
            #   == sum_h ctx_h @ Wo[h*Dh:(h+1)*Dh, :]
            attn_out = attn_out + jnp.dot(ctx, wo[c0:c1, :],
                                          preferred_element_type=jnp.float32)
        attn_out = attn_out + vec(base + V_BO, HIDDEN)

        hidden = ln(hidden + attn_out, base + V_LN1G, base + V_LN1B)

        ffn = gelu(jnp.dot(hidden, wi, preferred_element_type=jnp.float32)
                   + vec(base + V_BI, INTERMEDIATE))
        ffn = (jnp.dot(ffn, wo2, preferred_element_type=jnp.float32)
               + vec(base + V_BO2, HIDDEN))
        hidden = ln(hidden + ffn, base + V_LN2G, base + V_LN2B)

    # --- BERT pooler + classifier on the [CLS] rows only ---------------------
    cls = jnp.concatenate([hidden[b * SEQ:b * SEQ + 1, :] for b in range(BATCH)],
                          axis=0)                          # (B, D)
    pool_w = w_head_ref[:, :HIDDEN]
    cls_w = w_head_ref[:, HIDDEN:]                         # (D, CLS_PAD), lane-padded
    # Dropout(0.1) is identity at inference.
    pooled = jnp.tanh(jnp.dot(cls, pool_w, preferred_element_type=jnp.float32)
                      + vec(ROW_POOL_B, HIDDEN))
    logits = (jnp.dot(pooled, cls_w, preferred_element_type=jnp.float32)
              + vec(ROW_CLS_B, CLS_PAD))
    out_ref[...] = jnp.where(logits >= 0.0, logits, LEAKY_SLOPE * logits)


def _full_spec(shape):
    zeros = (0,) * len(shape)
    # index_map receives (grid index, scalar-prefetch ref) -> always block 0.
    return pl.BlockSpec(shape, lambda i, ids, _z=zeros: _z)


def minilm_sentence_classification(params, input_ids, att_mask):
    B, S = input_ids.shape
    ids_flat = input_ids.reshape(-1).astype(jnp.int32)

    # pos + type table per flattened token (depends only on position).
    pos_type = jnp.tile(params["pos_emb"][:S] + params["type_emb"][0][None, :],
                        (B, 1)).astype(jnp.float32)

    # Block-diagonal additive attention bias over flattened tokens: within the
    # same batch element keys follow att_mask; cross-batch pairs get -1e9.
    tok_batch = jnp.repeat(jnp.arange(B), S)
    same_batch = tok_batch[:, None] == tok_batch[None, :]
    key_valid = att_mask.reshape(-1) > 0
    bias2d = jnp.where(same_batch & key_valid[None, :], 0.0, -1e9
                       ).astype(jnp.float32)

    args = (params["word_emb"], pos_type, bias2d, params["vecs"],
            params["w_a"], params["w_b"], params["w_head"])

    grid_spec = pltpu.PrefetchScalarGridSpec(
        num_scalar_prefetch=1,
        grid=(1,),
        in_specs=[_full_spec(a.shape) for a in args],
        out_specs=_full_spec((B, CLS_PAD)),
        scratch_shapes=[pltpu.VMEM((B * S, HIDDEN), jnp.float32)],
    )
    out = pl.pallas_call(
        _fused_kernel,
        out_shape=jax.ShapeDtypeStruct((B, CLS_PAD), jnp.float32),
        grid_spec=grid_spec,
        compiler_params=pltpu.CompilerParams(
            dimension_semantics=("arbitrary",)),
    )(ids_flat, *args)

    return out[:, :NUM_LABELS]


# ------------------------------ param init ------------------------------------
def _init_raw_params(key):
    def nrm(k, shape):
        return jax.random.normal(k, shape, jnp.float32) * 0.02

    keys = jax.random.split(key, 5 + LAYERS)
    raw = {
        "word_emb": nrm(keys[0], (VOCAB, HIDDEN)),
        "pos_emb": nrm(keys[1], (MAX_POS, HIDDEN)),
        "type_emb": nrm(keys[2], (2, HIDDEN)),
        "emb_ln_g": jnp.ones((HIDDEN,), jnp.float32),
        "emb_ln_b": jnp.zeros((HIDDEN,), jnp.float32),
        "pool_w": nrm(keys[3], (HIDDEN, HIDDEN)),
        "pool_b": jnp.zeros((HIDDEN,), jnp.float32),
        "cls_w": nrm(keys[4], (HIDDEN, NUM_LABELS)),
        "cls_b": jnp.zeros((NUM_LABELS,), jnp.float32),
        "layers": [],
    }
    for li in range(LAYERS):
        lk = jax.random.split(keys[5 + li], 6)
        wq = nrm(lk[0], (HIDDEN, HIDDEN))
        wk = nrm(lk[1], (HIDDEN, HIDDEN))
        wv = nrm(lk[2], (HIDDEN, HIDDEN))
        raw["layers"].append(dict(
            wqkv=jnp.concatenate([wq, wk, wv], axis=1),      # (D, 3D)
            bqkv=jnp.zeros((3 * HIDDEN,), jnp.float32),
            wo=nrm(lk[3], (HIDDEN, HIDDEN)),
            bo=jnp.zeros((HIDDEN,), jnp.float32),
            ln1_g=jnp.ones((HIDDEN,), jnp.float32),
            ln1_b=jnp.zeros((HIDDEN,), jnp.float32),
            wi=nrm(lk[4], (HIDDEN, INTERMEDIATE)),
            bi=jnp.zeros((INTERMEDIATE,), jnp.float32),
            wo2=nrm(lk[5], (INTERMEDIATE, HIDDEN)),
            bo2=jnp.zeros((HIDDEN,), jnp.float32),
            ln2_g=jnp.ones((HIDDEN,), jnp.float32),
            ln2_b=jnp.zeros((HIDDEN,), jnp.float32),
        ))
    return raw


def _pack_params(raw):
    """Pack raw params into the consolidated kernel inputs (8 refs total)."""
    vecs = jnp.zeros((NVEC, CLS_PAD), jnp.float32)

    def put(v, row, x):
        return v.at[row, :x.shape[0]].set(x)

    vecs = put(vecs, ROW_EMB_G, raw["emb_ln_g"])
    vecs = put(vecs, ROW_EMB_B, raw["emb_ln_b"])
    vecs = put(vecs, ROW_POOL_B, raw["pool_b"])
    vecs = put(vecs, ROW_CLS_B, raw["cls_b"])

    w_a, w_b = [], []
    for li, lp in enumerate(raw["layers"]):
        base = ROW_LAYER0 + li * ROWS_PER_LAYER
        vecs = put(vecs, base + V_BQKV, lp["bqkv"])
        vecs = put(vecs, base + V_BO, lp["bo"])
        vecs = put(vecs, base + V_LN1G, lp["ln1_g"])
        vecs = put(vecs, base + V_LN1B, lp["ln1_b"])
        vecs = put(vecs, base + V_BI, lp["bi"])
        vecs = put(vecs, base + V_BO2, lp["bo2"])
        vecs = put(vecs, base + V_LN2G, lp["ln2_g"])
        vecs = put(vecs, base + V_LN2B, lp["ln2_b"])
        w_a.append(jnp.concatenate([lp["wqkv"], lp["wo"], lp["wi"]], axis=1))
        w_b.append(lp["wo2"])

    cls_w_pad = jnp.zeros((HIDDEN, CLS_PAD), jnp.float32
                          ).at[:, :NUM_LABELS].set(raw["cls_w"])
    w_head = jnp.concatenate([raw["pool_w"], cls_w_pad], axis=1)   # (D, D+128)

    return {
        "word_emb": raw["word_emb"],
        "pos_emb": raw["pos_emb"],
        "type_emb": raw["type_emb"],
        "vecs": vecs,
        "w_a": jnp.stack(w_a),        # (L, D, 3D + D + I)
        "w_b": jnp.stack(w_b),        # (L, I, D)
        "w_head": w_head,             # (D, D + CLS_PAD)
    }


# --------------------------- pure-JAX reference --------------------------------
def _gelu_tanh(x):
    return 0.5 * x * (1.0 + jnp.tanh(0.7978845608028654
                                     * (x + 0.044715 * x * x * x)))


def _reference_forward(raw, input_ids, att_mask):
    B, S = input_ids.shape

    def ln(x, g, b):
        mu = jnp.mean(x, -1, keepdims=True)
        var = jnp.mean((x - mu) ** 2, -1, keepdims=True)
        return (x - mu) * jax.lax.rsqrt(var + LN_EPS) * g + b

    emb = (raw["word_emb"][input_ids] + raw["pos_emb"][:S][None]
           + raw["type_emb"][0][None, None])
    h = ln(emb, raw["emb_ln_g"], raw["emb_ln_b"])
    bias = (1.0 - att_mask.astype(jnp.float32))[:, None, None, :] * (-1e9)

    for lp in raw["layers"]:
        qkv = h @ lp["wqkv"] + lp["bqkv"]
        q, k, v = jnp.split(qkv, 3, axis=-1)

        def heads(t):
            return t.reshape(B, S, HEADS, HEAD_DIM).transpose(0, 2, 1, 3)

        q, k, v = heads(q), heads(k), heads(v)
        s = q @ k.transpose(0, 1, 3, 2) / (HEAD_DIM ** 0.5) + bias
        p = jax.nn.softmax(s, axis=-1)
        ctx = (p @ v).transpose(0, 2, 1, 3).reshape(B, S, HIDDEN)
        h = ln(h + ctx @ lp["wo"] + lp["bo"], lp["ln1_g"], lp["ln1_b"])
        ffn = _gelu_tanh(h @ lp["wi"] + lp["bi"]) @ lp["wo2"] + lp["bo2"]
        h = ln(h + ffn, lp["ln2_g"], lp["ln2_b"])

    pooled = jnp.tanh(h[:, 0, :] @ raw["pool_w"] + raw["pool_b"])
    logits = pooled @ raw["cls_w"] + raw["cls_b"]
    return jnp.where(logits >= 0.0, logits, LEAKY_SLOPE * logits)


# TODO(synk): Dropout(0.1) is treated as inference-mode identity (no RNG mask).


if __name__ == "__main__":
    key = jax.random.PRNGKey(0)
    pkey, ikey = jax.random.split(key)
    raw = _init_raw_params(pkey)
    packed = _pack_params(raw)

    input_ids = jax.random.randint(ikey, (BATCH, SEQ), 0, VOCAB, dtype=jnp.int32)
    att_mask = jnp.ones((BATCH, SEQ), jnp.float32)
    att_mask = att_mask.at[1, -2:].set(0.0)   # some padding in batch element 1

    fwd = jax.jit(minilm_sentence_classification)
    logits = fwd(packed, input_ids, att_mask)
    jax.block_until_ready(logits)
    assert logits.shape == (BATCH, NUM_LABELS)

    # Loose-tolerance check vs. pure-JAX reference (approx reciprocal in the
    # in-kernel softmax introduces ~1e-4 relative error).
    ref = _reference_forward(raw, input_ids, att_mask)
    max_err = float(jnp.max(jnp.abs(logits - ref)))
    assert max_err < 1e-2, f"kernel/reference mismatch, max|err|={max_err}"

    print("KERNEL_OK")
</pallas_src>

<mosaic_0001>
module attributes {stable_mosaic.version = 11 : i64} {
  func.func @_fused_kernel(%arg0: i32, %arg1: memref<16xi32, #tpu.memory_space<smem>>, %arg2: memref<100x32xf32, #tpu.memory_space<vmem>>, %arg3: memref<16x32xf32, #tpu.memory_space<vmem>>, %arg4: memref<16x16xf32, #tpu.memory_space<vmem>>, %arg5: memref<20x128xf32, #tpu.memory_space<vmem>>, %arg6: memref<2x32x192xf32, #tpu.memory_space<vmem>>, %arg7: memref<2x64x32xf32, #tpu.memory_space<vmem>>, %arg8: memref<32x160xf32, #tpu.memory_space<vmem>>, %arg9: memref<2x128xf32, #tpu.memory_space<vmem>>, %arg10: memref<16x32xf32, #tpu.memory_space<vmem>>) attributes {dimension_semantics = [#tpu.dimension_semantics<arbitrary>], iteration_bounds = array<i64: 1>, scalar_prefetch = 1 : i64, scratch_operands = 1 : i64, tpu.core_type = #tpu.core_type<tc>, window_params = [{pipeline_mode = #tpu.pipeline_mode<synchronous>, transform_indices = @transform_0, window_bounds = array<i64: 100, 32>}, {pipeline_mode = #tpu.pipeline_mode<synchronous>, transform_indices = @transform_1, window_bounds = array<i64: 16, 32>}, {pipeline_mode = #tpu.pipeline_mode<synchronous>, transform_indices = @transform_2, window_bounds = array<i64: 16, 16>}, {pipeline_mode = #tpu.pipeline_mode<synchronous>, transform_indices = @transform_3, window_bounds = array<i64: 20, 128>}, {pipeline_mode = #tpu.pipeline_mode<synchronous>, transform_indices = @transform_4, window_bounds = array<i64: 2, 32, 192>}, {pipeline_mode = #tpu.pipeline_mode<synchronous>, transform_indices = @transform_5, window_bounds = array<i64: 2, 64, 32>}, {pipeline_mode = #tpu.pipeline_mode<synchronous>, transform_indices = @transform_6, window_bounds = array<i64: 32, 160>}, {pipeline_mode = #tpu.pipeline_mode<synchronous>, transform_indices = @transform_7, window_bounds = array<i64: 2, 128>}]} {
    %c0 = arith.constant 0 : index
    %0 = memref.load %arg1[%c0] : memref<16xi32, #tpu.memory_space<smem>>
    %1 = arith.index_cast %0 : i32 to index
    %c0_0 = arith.constant 0 : index
    %2 = vector.load %arg2[%1, %c0_0] : memref<100x32xf32, #tpu.memory_space<vmem>>, vector<1x32xf32>
    %c0_1 = arith.constant 0 : index
    %c0_2 = arith.constant 0 : index
    %3 = vector.load %arg10[%c0_1, %c0_2] : memref<16x32xf32, #tpu.memory_space<vmem>>, vector<1x32xf32>
    tpu.vector_store %arg10[%c0_1, %c0_2], %2 {strides = array<i32>} : memref<16x32xf32, #tpu.memory_space<vmem>>, vector<1x32xf32>,
    %c1 = arith.constant 1 : index
    %4 = memref.load %arg1[%c1] : memref<16xi32, #tpu.memory_space<smem>>
    %5 = arith.index_cast %4 : i32 to index
    %c0_3 = arith.constant 0 : index
    %6 = vector.load %arg2[%5, %c0_3] : memref<100x32xf32, #tpu.memory_space<vmem>>, vector<1x32xf32>
    %c1_4 = arith.constant 1 : index
    %c0_5 = arith.constant 0 : index
    %7 = vector.load %arg10[%c1_4, %c0_5] : memref<16x32xf32, #tpu.memory_space<vmem>>, vector<1x32xf32>
    tpu.vector_store %arg10[%c1_4, %c0_5], %6 {strides = array<i32>} : memref<16x32xf32, #tpu.memory_space<vmem>>, vector<1x32xf32>,
    %c2 = arith.constant 2 : index
    %8 = memref.load %arg1[%c2] : memref<16xi32, #tpu.memory_space<smem>>
    %9 = arith.index_cast %8 : i32 to index
    %c0_6 = arith.constant 0 : index
    %10 = vector.load %arg2[%9, %c0_6] : memref<100x32xf32, #tpu.memory_space<vmem>>, vector<1x32xf32>
    %c2_7 = arith.constant 2 : index
    %c0_8 = arith.constant 0 : index
    %11 = vector.load %arg10[%c2_7, %c0_8] : memref<16x32xf32, #tpu.memory_space<vmem>>, vector<1x32xf32>
    tpu.vector_store %arg10[%c2_7, %c0_8], %10 {strides = array<i32>} : memref<16x32xf32, #tpu.memory_space<vmem>>, vector<1x32xf32>,
    %c3 = arith.constant 3 : index
    %12 = memref.load %arg1[%c3] : memref<16xi32, #tpu.memory_space<smem>>
    %13 = arith.index_cast %12 : i32 to index
    %c0_9 = arith.constant 0 : index
    %14 = vector.load %arg2[%13, %c0_9] : memref<100x32xf32, #tpu.memory_space<vmem>>, vector<1x32xf32>
    %c3_10 = arith.constant 3 : index
    %c0_11 = arith.constant 0 : index
    %15 = vector.load %arg10[%c3_10, %c0_11] : memref<16x32xf32, #tpu.memory_space<vmem>>, vector<1x32xf32>
    tpu.vector_store %arg10[%c3_10, %c0_11], %14 {strides = array<i32>} : memref<16x32xf32, #tpu.memory_space<vmem>>, vector<1x32xf32>,
    %c4 = arith.constant 4 : index
    %16 = memref.load %arg1[%c4] : memref<16xi32, #tpu.memory_space<smem>>
    %17 = arith.index_cast %16 : i32 to index
    %c0_12 = arith.constant 0 : index
    %18 = vector.load %arg2[%17, %c0_12] : memref<100x32xf32, #tpu.memory_space<vmem>>, vector<1x32xf32>
    %c4_13 = arith.constant 4 : index
    %c0_14 = arith.constant 0 : index
    %19 = vector.load %arg10[%c4_13, %c0_14] : memref<16x32xf32, #tpu.memory_space<vmem>>, vector<1x32xf32>
    tpu.vector_store %arg10[%c4_13, %c0_14], %18 {strides = array<i32>} : memref<16x32xf32, #tpu.memory_space<vmem>>, vector<1x32xf32>,
    %c5 = arith.constant 5 : index
    %20 = memref.load %arg1[%c5] : memref<16xi32, #tpu.memory_space<smem>>
    %21 = arith.index_cast %20 : i32 to index
    %c0_15 = arith.constant 0 : index
    %22 = vector.load %arg2[%21, %c0_15] : memref<100x32xf32, #tpu.memory_space<vmem>>, vector<1x32xf32>
    %c5_16 = arith.constant 5 : index
    %c0_17 = arith.constant 0 : index
    %23 = vector.load %arg10[%c5_16, %c0_17] : memref<16x32xf32, #tpu.memory_space<vmem>>, vector<1x32xf32>
    tpu.vector_store %arg10[%c5_16, %c0_17], %22 {strides = array<i32>} : memref<16x32xf32, #tpu.memory_space<vmem>>, vector<1x32xf32>,
    %c6 = arith.constant 6 : index
    %24 = memref.load %arg1[%c6] : memref<16xi32, #tpu.memory_space<smem>>
    %25 = arith.index_cast %24 : i32 to index
    %c0_18 = arith.constant 0 : index
    %26 = vector.load %arg2[%25, %c0_18] : memref<100x32xf32, #tpu.memory_space<vmem>>, vector<1x32xf32>
    %c6_19 = arith.constant 6 : index
    %c0_20 = arith.constant 0 : index
    %27 = vector.load %arg10[%c6_19, %c0_20] : memref<16x32xf32, #tpu.memory_space<vmem>>, vector<1x32xf32>
    tpu.vector_store %arg10[%c6_19, %c0_20], %26 {strides = array<i32>} : memref<16x32xf32, #tpu.memory_space<vmem>>, vector<1x32xf32>,
    %c7 = arith.constant 7 : index
    %28 = memref.load %arg1[%c7] : memref<16xi32, #tpu.memory_space<smem>>
    %29 = arith.index_cast %28 : i32 to index
    %c0_21 = arith.constant 0 : index
    %30 = vector.load %arg2[%29, %c0_21] : memref<100x32xf32, #tpu.memory_space<vmem>>, vector<1x32xf32>
    %c7_22 = arith.constant 7 : index
    %c0_23 = arith.constant 0 : index
    %31 = vector.load %arg10[%c7_22, %c0_23] : memref<16x32xf32, #tpu.memory_space<vmem>>, vector<1x32xf32>
    tpu.vector_store %arg10[%c7_22, %c0_23], %30 {strides = array<i32>} : memref<16x32xf32, #tpu.memory_space<vmem>>, vector<1x32xf32>,
    %c8 = arith.constant 8 : index
    %32 = memref.load %arg1[%c8] : memref<16xi32, #tpu.memory_space<smem>>
    %33 = arith.index_cast %32 : i32 to index
    %c0_24 = arith.constant 0 : index
    %34 = vector.load %arg2[%33, %c0_24] : memref<100x32xf32, #tpu.memory_space<vmem>>, vector<1x32xf32>
    %c8_25 = arith.constant 8 : index
    %c0_26 = arith.constant 0 : index
    %35 = vector.load %arg10[%c8_25, %c0_26] : memref<16x32xf32, #tpu.memory_space<vmem>>, vector<1x32xf32>
    tpu.vector_store %arg10[%c8_25, %c0_26], %34 {strides = array<i32>} : memref<16x32xf32, #tpu.memory_space<vmem>>, vector<1x32xf32>,
    %c9 = arith.constant 9 : index
    %36 = memref.load %arg1[%c9] : memref<16xi32, #tpu.memory_space<smem>>
    %37 = arith.index_cast %36 : i32 to index
    %c0_27 = arith.constant 0 : index
    %38 = vector.load %arg2[%37, %c0_27] : memref<100x32xf32, #tpu.memory_space<vmem>>, vector<1x32xf32>
    %c9_28 = arith.constant 9 : index
    %c0_29 = arith.constant 0 : index
    %39 = vector.load %arg10[%c9_28, %c0_29] : memref<16x32xf32, #tpu.memory_space<vmem>>, vector<1x32xf32>
    tpu.vector_store %arg10[%c9_28, %c0_29], %38 {strides = array<i32>} : memref<16x32xf32, #tpu.memory_space<vmem>>, vector<1x32xf32>,
    %c10 = arith.constant 10 : index
    %40 = memref.load %arg1[%c10] : memref<16xi32, #tpu.memory_space<smem>>
    %41 = arith.index_cast %40 : i32 to index
    %c0_30 = arith.constant 0 : index
    %42 = vector.load %arg2[%41, %c0_30] : memref<100x32xf32, #tpu.memory_space<vmem>>, vector<1x32xf32>
    %c10_31 = arith.constant 10 : index
    %c0_32 = arith.constant 0 : index
    %43 = vector.load %arg10[%c10_31, %c0_32] : memref<16x32xf32, #tpu.memory_space<vmem>>, vector<1x32xf32>
    tpu.vector_store %arg10[%c10_31, %c0_32], %42 {strides = array<i32>} : memref<16x32xf32, #tpu.memory_space<vmem>>, vector<1x32xf32>,
    %c11 = arith.constant 11 : index
    %44 = memref.load %arg1[%c11] : memref<16xi32, #tpu.memory_space<smem>>
    %45 = arith.index_cast %44 : i32 to index
    %c0_33 = arith.constant 0 : index
    %46 = vector.load %arg2[%45, %c0_33] : memref<100x32xf32, #tpu.memory_space<vmem>>, vector<1x32xf32>
    %c11_34 = arith.constant 11 : index
    %c0_35 = arith.constant 0 : index
    %47 = vector.load %arg10[%c11_34, %c0_35] : memref<16x32xf32, #tpu.memory_space<vmem>>, vector<1x32xf32>
    tpu.vector_store %arg10[%c11_34, %c0_35], %46 {strides = array<i32>} : memref<16x32xf32, #tpu.memory_space<vmem>>, vector<1x32xf32>,
    %c12 = arith.constant 12 : index
    %48 = memref.load %arg1[%c12] : memref<16xi32, #tpu.memory_space<smem>>
    %49 = arith.index_cast %48 : i32 to index
    %c0_36 = arith.constant 0 : index
    %50 = vector.load %arg2[%49, %c0_36] : memref<100x32xf32, #tpu.memory_space<vmem>>, vector<1x32xf32>
    %c12_37 = arith.constant 12 : index
    %c0_38 = arith.constant 0 : index
    %51 = vector.load %arg10[%c12_37, %c0_38] : memref<16x32xf32, #tpu.memory_space<vmem>>, vector<1x32xf32>
    tpu.vector_store %arg10[%c12_37, %c0_38], %50 {strides = array<i32>} : memref<16x32xf32, #tpu.memory_space<vmem>>, vector<1x32xf32>,
    %c13 = arith.constant 13 : index
    %52 = memref.load %arg1[%c13] : memref<16xi32, #tpu.memory_space<smem>>
    %53 = arith.index_cast %52 : i32 to index
    %c0_39 = arith.constant 0 : index
    %54 = vector.load %arg2[%53, %c0_39] : memref<100x32xf32, #tpu.memory_space<vmem>>, vector<1x32xf32>
    %c13_40 = arith.constant 13 : index
    %c0_41 = arith.constant 0 : index
    %55 = vector.load %arg10[%c13_40, %c0_41] : memref<16x32xf32, #tpu.memory_space<vmem>>, vector<1x32xf32>
    tpu.vector_store %arg10[%c13_40, %c0_41], %54 {strides = array<i32>} : memref<16x32xf32, #tpu.memory_space<vmem>>, vector<1x32xf32>,
    %c14 = arith.constant 14 : index
    %56 = memref.load %arg1[%c14] : memref<16xi32, #tpu.memory_space<smem>>
    %57 = arith.index_cast %56 : i32 to index
    %c0_42 = arith.constant 0 : index
    %58 = vector.load %arg2[%57, %c0_42] : memref<100x32xf32, #tpu.memory_space<vmem>>, vector<1x32xf32>
    %c14_43 = arith.constant 14 : index
    %c0_44 = arith.constant 0 : index
    %59 = vector.load %arg10[%c14_43, %c0_44] : memref<16x32xf32, #tpu.memory_space<vmem>>, vector<1x32xf32>
    tpu.vector_store %arg10[%c14_43, %c0_44], %58 {strides = array<i32>} : memref<16x32xf32, #tpu.memory_space<vmem>>, vector<1x32xf32>,
    %c15 = arith.constant 15 : index
    %60 = memref.load %arg1[%c15] : memref<16xi32, #tpu.memory_space<smem>>
    %61 = arith.index_cast %60 : i32 to index
    %c0_45 = arith.constant 0 : index
    %62 = vector.load %arg2[%61, %c0_45] : memref<100x32xf32, #tpu.memory_space<vmem>>, vector<1x32xf32>
    %c15_46 = arith.constant 15 : index
    %c0_47 = arith.constant 0 : index
    %63 = vector.load %arg10[%c15_46, %c0_47] : memref<16x32xf32, #tpu.memory_space<vmem>>, vector<1x32xf32>
    tpu.vector_store %arg10[%c15_46, %c0_47], %62 {strides = array<i32>} : memref<16x32xf32, #tpu.memory_space<vmem>>, vector<1x32xf32>,
    %c0_48 = arith.constant 0 : index
    %c0_49 = arith.constant 0 : index
    %64 = vector.load %arg10[%c0_48, %c0_49] : memref<16x32xf32, #tpu.memory_space<vmem>>, vector<16x32xf32>
    %c0_50 = arith.constant 0 : index
    %c0_51 = arith.constant 0 : index
    %65 = vector.load %arg3[%c0_50, %c0_51] : memref<16x32xf32, #tpu.memory_space<vmem>>, vector<16x32xf32>
    %66 = arith.addf %64, %65 : vector<16x32xf32>
    %cst = arith.constant dense<0.000000e+00> : vector<16xf32>
    %67 = vector.multi_reduction <add>, %66, %cst [1] : vector<16x32xf32> to vector<16xf32>
    %68 = vector.shape_cast %67 : vector<16xf32> to vector<16x1xf32>
    %cst_52 = arith.constant 3.200000e+01 : f32
    %69 = vector.broadcast %cst_52 : f32 to vector<16x1xf32>
    %70 = arith.divf %68, %69 : vector<16x1xf32>
    %71 = vector.broadcast %70 : vector<16x1xf32> to vector<16x32xf32>
    %72 = arith.subf %66, %71 : vector<16x32xf32>
    %73 = arith.mulf %72, %72 : vector<16x32xf32>
    %cst_53 = arith.constant dense<0.000000e+00> : vector<16xf32>
    %74 = vector.multi_reduction <add>, %73, %cst_53 [1] : vector<16x32xf32> to vector<16xf32>
    %75 = vector.shape_cast %74 : vector<16xf32> to vector<16x1xf32>
    %cst_54 = arith.constant 3.200000e+01 : f32
    %76 = vector.broadcast %cst_54 : f32 to vector<16x1xf32>
    %77 = arith.divf %75, %76 : vector<16x1xf32>
    %78 = vector.broadcast %70 : vector<16x1xf32> to vector<16x32xf32>
    %79 = arith.subf %66, %78 : vector<16x32xf32>
    %cst_55 = arith.constant 9.99999996E-13 : f32
    %80 = vector.broadcast %cst_55 : f32 to vector<16x1xf32>
    %81 = arith.addf %77, %80 : vector<16x1xf32>
    %82 = math.rsqrt %81 : vector<16x1xf32>
    %83 = vector.broadcast %82 : vector<16x1xf32> to vector<16x32xf32>
    %84 = arith.mulf %79, %83 : vector<16x32xf32>
    %c0_56 = arith.constant 0 : index
    %c0_57 = arith.constant 0 : index
    %85 = vector.load %arg5[%c0_56, %c0_57] : memref<20x128xf32, #tpu.memory_space<vmem>>, vector<1x32xf32>
    %86 = vector.broadcast %85 : vector<1x32xf32> to vector<16x32xf32>
    %87 = arith.mulf %84, %86 : vector<16x32xf32>
    %c1_58 = arith.constant 1 : index
    %c0_59 = arith.constant 0 : index
    %88 = vector.load %arg5[%c1_58, %c0_59] : memref<20x128xf32, #tpu.memory_space<vmem>>, vector<1x32xf32>
    %89 = vector.broadcast %88 : vector<1x32xf32> to vector<16x32xf32>
    %90 = arith.addf %87, %89 : vector<16x32xf32>
    %c0_60 = arith.constant 0 : index
    %c0_61 = arith.constant 0 : index
    %91 = vector.load %arg4[%c0_60, %c0_61] : memref<16x16xf32, #tpu.memory_space<vmem>>, vector<16x16xf32>
    %c0_62 = arith.constant 0 : index
    %c0_63 = arith.constant 0 : index
    %c0_64 = arith.constant 0 : index
    %92 = vector.load %arg6[%c0_62, %c0_63, %c0_64] : memref<2x32x192xf32, #tpu.memory_space<vmem>>, vector<1x32x192xf32>
    %93 = vector.shape_cast %92 : vector<1x32x192xf32> to vector<32x192xf32>
    %94 = vector.extract_strided_slice %93 {offsets = [0, 0], sizes = [32, 96], strides = [1, 1]} : vector<32x192xf32> to vector<32x96xf32>
    %95 = vector.extract_strided_slice %93 {offsets = [0, 96], sizes = [32, 32], strides = [1, 1]} : vector<32x192xf32> to vector<32x32xf32>
    %96 = vector.extract_strided_slice %93 {offsets = [0, 128], sizes = [32, 64], strides = [1, 1]} : vector<32x192xf32> to vector<32x64xf32>
    %c0_65 = arith.constant 0 : index
    %c0_66 = arith.constant 0 : index
    %c0_67 = arith.constant 0 : index
    %97 = vector.load %arg7[%c0_65, %c0_66, %c0_67] : memref<2x64x32xf32, #tpu.memory_space<vmem>>, vector<1x64x32xf32>
    %98 = vector.shape_cast %97 : vector<1x64x32xf32> to vector<64x32xf32>
    %cst_68 = arith.constant dense<0.000000e+00> : vector<16x96xf32>
    %99 = tpu.matmul %90, %94, %cst_68 {dimension_numbers = #tpu.dot_dimension_numbers<[1], [0], [0], [1], [0, 0, 1, 1], [], []>} : vector<16x32xf32>, vector<32x96xf32>, vector<16x96xf32> -> vector<16x96xf32>
    %c4_69 = arith.constant 4 : index
    %c0_70 = arith.constant 0 : index
    %100 = vector.load %arg5[%c4_69, %c0_70] : memref<20x128xf32, #tpu.memory_space<vmem>>, vector<1x96xf32>
    %101 = vector.broadcast %100 : vector<1x96xf32> to vector<16x96xf32>
    %102 = arith.addf %99, %101 : vector<16x96xf32>
    %103 = vector.extract_strided_slice %102 {offsets = [0, 0], sizes = [16, 32], strides = [1, 1]} : vector<16x96xf32> to vector<16x32xf32>
    %104 = vector.extract_strided_slice %102 {offsets = [0, 32], sizes = [16, 32], strides = [1, 1]} : vector<16x96xf32> to vector<16x32xf32>
    %105 = vector.extract_strided_slice %102 {offsets = [0, 64], sizes = [16, 32], strides = [1, 1]} : vector<16x96xf32> to vector<16x32xf32>
    %cst_71 = arith.constant 0.000000e+00 : f32
    %106 = vector.broadcast %cst_71 : f32 to vector<16x32xf32>
    %107 = vector.extract_strided_slice %103 {offsets = [0, 0], sizes = [16, 16], strides = [1, 1]} : vector<16x32xf32> to vector<16x16xf32>
    %108 = vector.extract_strided_slice %104 {offsets = [0, 0], sizes = [16, 16], strides = [1, 1]} : vector<16x32xf32> to vector<16x16xf32>
    %109 = vector.extract_strided_slice %105 {offsets = [0, 0], sizes = [16, 16], strides = [1, 1]} : vector<16x32xf32> to vector<16x16xf32>
    %cst_72 = arith.constant dense<0.000000e+00> : vector<16x16xf32>
    %110 = tpu.matmul %107, %108, %cst_72 {dimension_numbers = #tpu.dot_dimension_numbers<[1], [1], [0], [0], [0, 0, 1, 0], [], []>} : vector<16x16xf32>, vector<16x16xf32>, vector<16x16xf32> -> vector<16x16xf32>
    %cst_73 = arith.constant 2.500000e-01 : f32
    %111 = vector.broadcast %cst_73 : f32 to vector<16x16xf32>
    %112 = arith.mulf %110, %111 : vector<16x16xf32>
    %113 = arith.addf %112, %91 : vector<16x16xf32>
    %cst_74 = arith.constant dense<0xFF800000> : vector<16xf32>
    %114 = vector.multi_reduction <maximumf>, %113, %cst_74 [1] : vector<16x16xf32> to vector<16xf32>
    %115 = vector.shape_cast %114 : vector<16xf32> to vector<16x1xf32>
    %116 = vector.broadcast %115 : vector<16x1xf32> to vector<16x16xf32>
    %117 = arith.subf %113, %116 : vector<16x16xf32>
    %118 = math.exp %117 : vector<16x16xf32>
    %cst_75 = arith.constant dense<0.000000e+00> : vector<16xf32>
    %119 = vector.multi_reduction <add>, %118, %cst_75 [1] : vector<16x16xf32> to vector<16xf32>
    %120 = vector.shape_cast %119 : vector<16xf32> to vector<16x1xf32>
    %121 = tpu.reciprocal %120 {approx = true} : vector<16x1xf32> -> vector<16x1xf32>
    %122 = vector.broadcast %121 : vector<16x1xf32> to vector<16x16xf32>
    %123 = arith.mulf %118, %122 : vector<16x16xf32>
    %cst_76 = arith.constant dense<0.000000e+00> : vector<16x16xf32>
    %124 = tpu.matmul %123, %109, %cst_76 {dimension_numbers = #tpu.dot_dimension_numbers<[1], [0], [0], [1], [0, 0, 1, 1], [], []>} : vector<16x16xf32>, vector<16x16xf32>, vector<16x16xf32> -> vector<16x16xf32>
    %125 = vector.extract_strided_slice %95 {offsets = [0, 0], sizes = [16, 32], strides = [1, 1]} : vector<32x32xf32> to vector<16x32xf32>
    %cst_77 = arith.constant dense<0.000000e+00> : vector<16x32xf32>
    %126 = tpu.matmul %124, %125, %cst_77 {dimension_numbers = #tpu.dot_dimension_numbers<[1], [0], [0], [1], [0, 0, 1, 1], [], []>} : vector<16x16xf32>, vector<16x32xf32>, vector<16x32xf32> -> vector<16x32xf32>
    %127 = arith.addf %106, %126 : vector<16x32xf32>
    %128 = vector.extract_strided_slice %103 {offsets = [0, 16], sizes = [16, 16], strides = [1, 1]} : vector<16x32xf32> to vector<16x16xf32>
    %129 = vector.extract_strided_slice %104 {offsets = [0, 16], sizes = [16, 16], strides = [1, 1]} : vector<16x32xf32> to vector<16x16xf32>
    %130 = vector.extract_strided_slice %105 {offsets = [0, 16], sizes = [16, 16], strides = [1, 1]} : vector<16x32xf32> to vector<16x16xf32>
    %cst_78 = arith.constant dense<0.000000e+00> : vector<16x16xf32>
    %131 = tpu.matmul %128, %129, %cst_78 {dimension_numbers = #tpu.dot_dimension_numbers<[1], [1], [0], [0], [0, 0, 1, 0], [], []>} : vector<16x16xf32>, vector<16x16xf32>, vector<16x16xf32> -> vector<16x16xf32>
    %cst_79 = arith.constant 2.500000e-01 : f32
    %132 = vector.broadcast %cst_79 : f32 to vector<16x16xf32>
    %133 = arith.mulf %131, %132 : vector<16x16xf32>
    %134 = arith.addf %133, %91 : vector<16x16xf32>
    %cst_80 = arith.constant dense<0xFF800000> : vector<16xf32>
    %135 = vector.multi_reduction <maximumf>, %134, %cst_80 [1] : vector<16x16xf32> to vector<16xf32>
    %136 = vector.shape_cast %135 : vector<16xf32> to vector<16x1xf32>
    %137 = vector.broadcast %136 : vector<16x1xf32> to vector<16x16xf32>
    %138 = arith.subf %134, %137 : vector<16x16xf32>
    %139 = math.exp %138 : vector<16x16xf32>
    %cst_81 = arith.constant dense<0.000000e+00> : vector<16xf32>
    %140 = vector.multi_reduction <add>, %139, %cst_81 [1] : vector<16x16xf32> to vector<16xf32>
    %141 = vector.shape_cast %140 : vector<16xf32> to vector<16x1xf32>
    %142 = tpu.reciprocal %141 {approx = true} : vector<16x1xf32> -> vector<16x1xf32>
    %143 = vector.broadcast %142 : vector<16x1xf32> to vector<16x16xf32>
    %144 = arith.mulf %139, %143 : vector<16x16xf32>
    %cst_82 = arith.constant dense<0.000000e+00> : vector<16x16xf32>
    %145 = tpu.matmul %144, %130, %cst_82 {dimension_numbers = #tpu.dot_dimension_numbers<[1], [0], [0], [1], [0, 0, 1, 1], [], []>} : vector<16x16xf32>, vector<16x16xf32>, vector<16x16xf32> -> vector<16x16xf32>
    %146 = vector.extract_strided_slice %95 {offsets = [16, 0], sizes = [16, 32], strides = [1, 1]} : vector<32x32xf32> to vector<16x32xf32>
    %cst_83 = arith.constant dense<0.000000e+00> : vector<16x32xf32>
    %147 = tpu.matmul %145, %146, %cst_83 {dimension_numbers = #tpu.dot_dimension_numbers<[1], [0], [0], [1], [0, 0, 1, 1], [], []>} : vector<16x16xf32>, vector<16x32xf32>, vector<16x32xf32> -> vector<16x32xf32>
    %148 = arith.addf %127, %147 : vector<16x32xf32>
    %c5_84 = arith.constant 5 : index
    %c0_85 = arith.constant 0 : index
    %149 = vector.load %arg5[%c5_84, %c0_85] : memref<20x128xf32, #tpu.memory_space<vmem>>, vector<1x32xf32>
    %150 = vector.broadcast %149 : vector<1x32xf32> to vector<16x32xf32>
    %151 = arith.addf %148, %150 : vector<16x32xf32>
    %152 = arith.addf %90, %151 : vector<16x32xf32>
    %cst_86 = arith.constant dense<0.000000e+00> : vector<16xf32>
    %153 = vector.multi_reduction <add>, %152, %cst_86 [1] : vector<16x32xf32> to vector<16xf32>
    %154 = vector.shape_cast %153 : vector<16xf32> to vector<16x1xf32>
    %cst_87 = arith.constant 3.200000e+01 : f32
    %155 = vector.broadcast %cst_87 : f32 to vector<16x1xf32>
    %156 = arith.divf %154, %155 : vector<16x1xf32>
    %157 = vector.broadcast %156 : vector<16x1xf32> to vector<16x32xf32>
    %158 = arith.subf %152, %157 : vector<16x32xf32>
    %159 = arith.mulf %158, %158 : vector<16x32xf32>
    %cst_88 = arith.constant dense<0.000000e+00> : vector<16xf32>
    %160 = vector.multi_reduction <add>, %159, %cst_88 [1] : vector<16x32xf32> to vector<16xf32>
    %161 = vector.shape_cast %160 : vector<16xf32> to vector<16x1xf32>
    %cst_89 = arith.constant 3.200000e+01 : f32
    %162 = vector.broadcast %cst_89 : f32 to vector<16x1xf32>
    %163 = arith.divf %161, %162 : vector<16x1xf32>
    %164 = vector.broadcast %156 : vector<16x1xf32> to vector<16x32xf32>
    %165 = arith.subf %152, %164 : vector<16x32xf32>
    %cst_90 = arith.constant 9.99999996E-13 : f32
    %166 = vector.broadcast %cst_90 : f32 to vector<16x1xf32>
    %167 = arith.addf %163, %166 : vector<16x1xf32>
    %168 = math.rsqrt %167 : vector<16x1xf32>
    %169 = vector.broadcast %168 : vector<16x1xf32> to vector<16x32xf32>
    %170 = arith.mulf %165, %169 : vector<16x32xf32>
    %c6_91 = arith.constant 6 : index
    %c0_92 = arith.constant 0 : index
    %171 = vector.load %arg5[%c6_91, %c0_92] : memref<20x128xf32, #tpu.memory_space<vmem>>, vector<1x32xf32>
    %172 = vector.broadcast %171 : vector<1x32xf32> to vector<16x32xf32>
    %173 = arith.mulf %170, %172 : vector<16x32xf32>
    %c7_93 = arith.constant 7 : index
    %c0_94 = arith.constant 0 : index
    %174 = vector.load %arg5[%c7_93, %c0_94] : memref<20x128xf32, #tpu.memory_space<vmem>>, vector<1x32xf32>
    %175 = vector.broadcast %174 : vector<1x32xf32> to vector<16x32xf32>
    %176 = arith.addf %173, %175 : vector<16x32xf32>
    %cst_95 = arith.constant dense<0.000000e+00> : vector<16x64xf32>
    %177 = tpu.matmul %176, %96, %cst_95 {dimension_numbers = #tpu.dot_dimension_numbers<[1], [0], [0], [1], [0, 0, 1, 1], [], []>} : vector<16x32xf32>, vector<32x64xf32>, vector<16x64xf32> -> vector<16x64xf32>
    %c8_96 = arith.constant 8 : index
    %c0_97 = arith.constant 0 : index
    %178 = vector.load %arg5[%c8_96, %c0_97] : memref<20x128xf32, #tpu.memory_space<vmem>>, vector<1x64xf32>
    %179 = vector.broadcast %178 : vector<1x64xf32> to vector<16x64xf32>
    %180 = arith.addf %177, %179 : vector<16x64xf32>
    %cst_98 = arith.constant 5.000000e-01 : f32
    %181 = vector.broadcast %cst_98 : f32 to vector<16x64xf32>
    %182 = arith.mulf %181, %180 : vector<16x64xf32>
    %cst_99 = arith.constant 4.471500e-02 : f32
    %183 = vector.broadcast %cst_99 : f32 to vector<16x64xf32>
    %184 = arith.mulf %183, %180 : vector<16x64xf32>
    %185 = arith.mulf %184, %180 : vector<16x64xf32>
    %186 = arith.mulf %185, %180 : vector<16x64xf32>
    %187 = arith.addf %180, %186 : vector<16x64xf32>
    %cst_100 = arith.constant 0.797884583 : f32
    %188 = vector.broadcast %cst_100 : f32 to vector<16x64xf32>
    %189 = arith.mulf %188, %187 : vector<16x64xf32>
    %190 = math.tanh %189 : vector<16x64xf32>
    %cst_101 = arith.constant 1.000000e+00 : f32
    %191 = vector.broadcast %cst_101 : f32 to vector<16x64xf32>
    %192 = arith.addf %191, %190 : vector<16x64xf32>
    %193 = arith.mulf %182, %192 : vector<16x64xf32>
    %cst_102 = arith.constant dense<0.000000e+00> : vector<16x32xf32>
    %194 = tpu.matmul %193, %98, %cst_102 {dimension_numbers = #tpu.dot_dimension_numbers<[1], [0], [0], [1], [0, 0, 1, 1], [], []>} : vector<16x64xf32>, vector<64x32xf32>, vector<16x32xf32> -> vector<16x32xf32>
    %c9_103 = arith.constant 9 : index
    %c0_104 = arith.constant 0 : index
    %195 = vector.load %arg5[%c9_103, %c0_104] : memref<20x128xf32, #tpu.memory_space<vmem>>, vector<1x32xf32>
    %196 = vector.broadcast %195 : vector<1x32xf32> to vector<16x32xf32>
    %197 = arith.addf %194, %196 : vector<16x32xf32>
    %198 = arith.addf %176, %197 : vector<16x32xf32>
    %cst_105 = arith.constant dense<0.000000e+00> : vector<16xf32>
    %199 = vector.multi_reduction <add>, %198, %cst_105 [1] : vector<16x32xf32> to vector<16xf32>
    %200 = vector.shape_cast %199 : vector<16xf32> to vector<16x1xf32>
    %cst_106 = arith.constant 3.200000e+01 : f32
    %201 = vector.broadcast %cst_106 : f32 to vector<16x1xf32>
    %202 = arith.divf %200, %201 : vector<16x1xf32>
    %203 = vector.broadcast %202 : vector<16x1xf32> to vector<16x32xf32>
    %204 = arith.subf %198, %203 : vector<16x32xf32>
    %205 = arith.mulf %204, %204 : vector<16x32xf32>
    %cst_107 = arith.constant dense<0.000000e+00> : vector<16xf32>
    %206 = vector.multi_reduction <add>, %205, %cst_107 [1] : vector<16x32xf32> to vector<16xf32>
    %207 = vector.shape_cast %206 : vector<16xf32> to vector<16x1xf32>
    %cst_108 = arith.constant 3.200000e+01 : f32
    %208 = vector.broadcast %cst_108 : f32 to vector<16x1xf32>
    %209 = arith.divf %207, %208 : vector<16x1xf32>
    %210 = vector.broadcast %202 : vector<16x1xf32> to vector<16x32xf32>
    %211 = arith.subf %198, %210 : vector<16x32xf32>
    %cst_109 = arith.constant 9.99999996E-13 : f32
    %212 = vector.broadcast %cst_109 : f32 to vector<16x1xf32>
    %213 = arith.addf %209, %212 : vector<16x1xf32>
    %214 = math.rsqrt %213 : vector<16x1xf32>
    %215 = vector.broadcast %214 : vector<16x1xf32> to vector<16x32xf32>
    %216 = arith.mulf %211, %215 : vector<16x32xf32>
    %c10_110 = arith.constant 10 : index
    %c0_111 = arith.constant 0 : index
    %217 = vector.load %arg5[%c10_110, %c0_111] : memref<20x128xf32, #tpu.memory_space<vmem>>, vector<1x32xf32>
    %218 = vector.broadcast %217 : vector<1x32xf32> to vector<16x32xf32>
    %219 = arith.mulf %216, %218 : vector<16x32xf32>
    %c11_112 = arith.constant 11 : index
    %c0_113 = arith.constant 0 : index
    %220 = vector.load %arg5[%c11_112, %c0_113] : memref<20x128xf32, #tpu.memory_space<vmem>>, vector<1x32xf32>
    %221 = vector.broadcast %220 : vector<1x32xf32> to vector<16x32xf32>
    %222 = arith.addf %219, %221 : vector<16x32xf32>
    %c1_114 = arith.constant 1 : index
    %c0_115 = arith.constant 0 : index
    %c0_116 = arith.constant 0 : index
    %223 = vector.load %arg6[%c1_114, %c0_115, %c0_116] : memref<2x32x192xf32, #tpu.memory_space<vmem>>, vector<1x32x192xf32>
    %224 = vector.shape_cast %223 : vector<1x32x192xf32> to vector<32x192xf32>
    %225 = vector.extract_strided_slice %224 {offsets = [0, 0], sizes = [32, 96], strides = [1, 1]} : vector<32x192xf32> to vector<32x96xf32>
    %226 = vector.extract_strided_slice %224 {offsets = [0, 96], sizes = [32, 32], strides = [1, 1]} : vector<32x192xf32> to vector<32x32xf32>
    %227 = vector.extract_strided_slice %224 {offsets = [0, 128], sizes = [32, 64], strides = [1, 1]} : vector<32x192xf32> to vector<32x64xf32>
    %c1_117 = arith.constant 1 : index
    %c0_118 = arith.constant 0 : index
    %c0_119 = arith.constant 0 : index
    %228 = vector.load %arg7[%c1_117, %c0_118, %c0_119] : memref<2x64x32xf32, #tpu.memory_space<vmem>>, vector<1x64x32xf32>
    %229 = vector.shape_cast %228 : vector<1x64x32xf32> to vector<64x32xf32>
    %cst_120 = arith.constant dense<0.000000e+00> : vector<16x96xf32>
    %230 = tpu.matmul %222, %225, %cst_120 {dimension_numbers = #tpu.dot_dimension_numbers<[1], [0], [0], [1], [0, 0, 1, 1], [], []>} : vector<16x32xf32>, vector<32x96xf32>, vector<16x96xf32> -> vector<16x96xf32>
    %c12_121 = arith.constant 12 : index
    %c0_122 = arith.constant 0 : index
    %231 = vector.load %arg5[%c12_121, %c0_122] : memref<20x128xf32, #tpu.memory_space<vmem>>, vector<1x96xf32>
    %232 = vector.broadcast %231 : vector<1x96xf32> to vector<16x96xf32>
    %233 = arith.addf %230, %232 : vector<16x96xf32>
    %234 = vector.extract_strided_slice %233 {offsets = [0, 0], sizes = [16, 32], strides = [1, 1]} : vector<16x96xf32> to vector<16x32xf32>
    %235 = vector.extract_strided_slice %233 {offsets = [0, 32], sizes = [16, 32], strides = [1, 1]} : vector<16x96xf32> to vector<16x32xf32>
    %236 = vector.extract_strided_slice %233 {offsets = [0, 64], sizes = [16, 32], strides = [1, 1]} : vector<16x96xf32> to vector<16x32xf32>
    %cst_123 = arith.constant 0.000000e+00 : f32
    %237 = vector.broadcast %cst_123 : f32 to vector<16x32xf32>
    %238 = vector.extract_strided_slice %234 {offsets = [0, 0], sizes = [16, 16], strides = [1, 1]} : vector<16x32xf32> to vector<16x16xf32>
    %239 = vector.extract_strided_slice %235 {offsets = [0, 0], sizes = [16, 16], strides = [1, 1]} : vector<16x32xf32> to vector<16x16xf32>
    %240 = vector.extract_strided_slice %236 {offsets = [0, 0], sizes = [16, 16], strides = [1, 1]} : vector<16x32xf32> to vector<16x16xf32>
    %cst_124 = arith.constant dense<0.000000e+00> : vector<16x16xf32>
    %241 = tpu.matmul %238, %239, %cst_124 {dimension_numbers = #tpu.dot_dimension_numbers<[1], [1], [0], [0], [0, 0, 1, 0], [], []>} : vector<16x16xf32>, vector<16x16xf32>, vector<16x16xf32> -> vector<16x16xf32>
    %cst_125 = arith.constant 2.500000e-01 : f32
    %242 = vector.broadcast %cst_125 : f32 to vector<16x16xf32>
    %243 = arith.mulf %241, %242 : vector<16x16xf32>
    %244 = arith.addf %243, %91 : vector<16x16xf32>
    %cst_126 = arith.constant dense<0xFF800000> : vector<16xf32>
    %245 = vector.multi_reduction <maximumf>, %244, %cst_126 [1] : vector<16x16xf32> to vector<16xf32>
    %246 = vector.shape_cast %245 : vector<16xf32> to vector<16x1xf32>
    %247 = vector.broadcast %246 : vector<16x1xf32> to vector<16x16xf32>
    %248 = arith.subf %244, %247 : vector<16x16xf32>
    %249 = math.exp %248 : vector<16x16xf32>
    %cst_127 = arith.constant dense<0.000000e+00> : vector<16xf32>
    %250 = vector.multi_reduction <add>, %249, %cst_127 [1] : vector<16x16xf32> to vector<16xf32>
    %251 = vector.shape_cast %250 : vector<16xf32> to vector<16x1xf32>
    %252 = tpu.reciprocal %251 {approx = true} : vector<16x1xf32> -> vector<16x1xf32>
    %253 = vector.broadcast %252 : vector<16x1xf32> to vector<16x16xf32>
    %254 = arith.mulf %249, %253 : vector<16x16xf32>
    %cst_128 = arith.constant dense<0.000000e+00> : vector<16x16xf32>
    %255 = tpu.matmul %254, %240, %cst_128 {dimension_numbers = #tpu.dot_dimension_numbers<[1], [0], [0], [1], [0, 0, 1, 1], [], []>} : vector<16x16xf32>, vector<16x16xf32>, vector<16x16xf32> -> vector<16x16xf32>
    %256 = vector.extract_strided_slice %226 {offsets = [0, 0], sizes = [16, 32], strides = [1, 1]} : vector<32x32xf32> to vector<16x32xf32>
    %cst_129 = arith.constant dense<0.000000e+00> : vector<16x32xf32>
    %257 = tpu.matmul %255, %256, %cst_129 {dimension_numbers = #tpu.dot_dimension_numbers<[1], [0], [0], [1], [0, 0, 1, 1], [], []>} : vector<16x16xf32>, vector<16x32xf32>, vector<16x32xf32> -> vector<16x32xf32>
    %258 = arith.addf %237, %257 : vector<16x32xf32>
    %259 = vector.extract_strided_slice %234 {offsets = [0, 16], sizes = [16, 16], strides = [1, 1]} : vector<16x32xf32> to vector<16x16xf32>
    %260 = vector.extract_strided_slice %235 {offsets = [0, 16], sizes = [16, 16], strides = [1, 1]} : vector<16x32xf32> to vector<16x16xf32>
    %261 = vector.extract_strided_slice %236 {offsets = [0, 16], sizes = [16, 16], strides = [1, 1]} : vector<16x32xf32> to vector<16x16xf32>
    %cst_130 = arith.constant dense<0.000000e+00> : vector<16x16xf32>
    %262 = tpu.matmul %259, %260, %cst_130 {dimension_numbers = #tpu.dot_dimension_numbers<[1], [1], [0], [0], [0, 0, 1, 0], [], []>} : vector<16x16xf32>, vector<16x16xf32>, vector<16x16xf32> -> vector<16x16xf32>
    %cst_131 = arith.constant 2.500000e-01 : f32
    %263 = vector.broadcast %cst_131 : f32 to vector<16x16xf32>
    %264 = arith.mulf %262, %263 : vector<16x16xf32>
    %265 = arith.addf %264, %91 : vector<16x16xf32>
    %cst_132 = arith.constant dense<0xFF800000> : vector<16xf32>
    %266 = vector.multi_reduction <maximumf>, %265, %cst_132 [1] : vector<16x16xf32> to vector<16xf32>
    %267 = vector.shape_cast %266 : vector<16xf32> to vector<16x1xf32>
    %268 = vector.broadcast %267 : vector<16x1xf32> to vector<16x16xf32>
    %269 = arith.subf %265, %268 : vector<16x16xf32>
    %270 = math.exp %269 : vector<16x16xf32>
    %cst_133 = arith.constant dense<0.000000e+00> : vector<16xf32>
    %271 = vector.multi_reduction <add>, %270, %cst_133 [1] : vector<16x16xf32> to vector<16xf32>
    %272 = vector.shape_cast %271 : vector<16xf32> to vector<16x1xf32>
    %273 = tpu.reciprocal %272 {approx = true} : vector<16x1xf32> -> vector<16x1xf32>
    %274 = vector.broadcast %273 : vector<16x1xf32> to vector<16x16xf32>
    %275 = arith.mulf %270, %274 : vector<16x16xf32>
    %cst_134 = arith.constant dense<0.000000e+00> : vector<16x16xf32>
    %276 = tpu.matmul %275, %261, %cst_134 {dimension_numbers = #tpu.dot_dimension_numbers<[1], [0], [0], [1], [0, 0, 1, 1], [], []>} : vector<16x16xf32>, vector<16x16xf32>, vector<16x16xf32> -> vector<16x16xf32>
    %277 = vector.extract_strided_slice %226 {offsets = [16, 0], sizes = [16, 32], strides = [1, 1]} : vector<32x32xf32> to vector<16x32xf32>
    %cst_135 = arith.constant dense<0.000000e+00> : vector<16x32xf32>
    %278 = tpu.matmul %276, %277, %cst_135 {dimension_numbers = #tpu.dot_dimension_numbers<[1], [0], [0], [1], [0, 0, 1, 1], [], []>} : vector<16x16xf32>, vector<16x32xf32>, vector<16x32xf32> -> vector<16x32xf32>
    %279 = arith.addf %258, %278 : vector<16x32xf32>
    %c13_136 = arith.constant 13 : index
    %c0_137 = arith.constant 0 : index
    %280 = vector.load %arg5[%c13_136, %c0_137] : memref<20x128xf32, #tpu.memory_space<vmem>>, vector<1x32xf32>
    %281 = vector.broadcast %280 : vector<1x32xf32> to vector<16x32xf32>
    %282 = arith.addf %279, %281 : vector<16x32xf32>
    %283 = arith.addf %222, %282 : vector<16x32xf32>
    %cst_138 = arith.constant dense<0.000000e+00> : vector<16xf32>
    %284 = vector.multi_reduction <add>, %283, %cst_138 [1] : vector<16x32xf32> to vector<16xf32>
    %285 = vector.shape_cast %284 : vector<16xf32> to vector<16x1xf32>
    %cst_139 = arith.constant 3.200000e+01 : f32
    %286 = vector.broadcast %cst_139 : f32 to vector<16x1xf32>
    %287 = arith.divf %285, %286 : vector<16x1xf32>
    %288 = vector.broadcast %287 : vector<16x1xf32> to vector<16x32xf32>
    %289 = arith.subf %283, %288 : vector<16x32xf32>
    %290 = arith.mulf %289, %289 : vector<16x32xf32>
    %cst_140 = arith.constant dense<0.000000e+00> : vector<16xf32>
    %291 = vector.multi_reduction <add>, %290, %cst_140 [1] : vector<16x32xf32> to vector<16xf32>
    %292 = vector.shape_cast %291 : vector<16xf32> to vector<16x1xf32>
    %cst_141 = arith.constant 3.200000e+01 : f32
    %293 = vector.broadcast %cst_141 : f32 to vector<16x1xf32>
    %294 = arith.divf %292, %293 : vector<16x1xf32>
    %295 = vector.broadcast %287 : vector<16x1xf32> to vector<16x32xf32>
    %296 = arith.subf %283, %295 : vector<16x32xf32>
    %cst_142 = arith.constant 9.99999996E-13 : f32
    %297 = vector.broadcast %cst_142 : f32 to vector<16x1xf32>
    %298 = arith.addf %294, %297 : vector<16x1xf32>
    %299 = math.rsqrt %298 : vector<16x1xf32>
    %300 = vector.broadcast %299 : vector<16x1xf32> to vector<16x32xf32>
    %301 = arith.mulf %296, %300 : vector<16x32xf32>
    %c14_143 = arith.constant 14 : index
    %c0_144 = arith.constant 0 : index
    %302 = vector.load %arg5[%c14_143, %c0_144] : memref<20x128xf32, #tpu.memory_space<vmem>>, vector<1x32xf32>
    %303 = vector.broadcast %302 : vector<1x32xf32> to vector<16x32xf32>
    %304 = arith.mulf %301, %303 : vector<16x32xf32>
    %c15_145 = arith.constant 15 : index
    %c0_146 = arith.constant 0 : index
    %305 = vector.load %arg5[%c15_145, %c0_146] : memref<20x128xf32, #tpu.memory_space<vmem>>, vector<1x32xf32>
    %306 = vector.broadcast %305 : vector<1x32xf32> to vector<16x32xf32>
    %307 = arith.addf %304, %306 : vector<16x32xf32>
    %cst_147 = arith.constant dense<0.000000e+00> : vector<16x64xf32>
    %308 = tpu.matmul %307, %227, %cst_147 {dimension_numbers = #tpu.dot_dimension_numbers<[1], [0], [0], [1], [0, 0, 1, 1], [], []>} : vector<16x32xf32>, vector<32x64xf32>, vector<16x64xf32> -> vector<16x64xf32>
    %c16 = arith.constant 16 : index
    %c0_148 = arith.constant 0 : index
    %309 = vector.load %arg5[%c16, %c0_148] : memref<20x128xf32, #tpu.memory_space<vmem>>, vector<1x64xf32>
    %310 = vector.broadcast %309 : vector<1x64xf32> to vector<16x64xf32>
    %311 = arith.addf %308, %310 : vector<16x64xf32>
    %cst_149 = arith.constant 5.000000e-01 : f32
    %312 = vector.broadcast %cst_149 : f32 to vector<16x64xf32>
    %313 = arith.mulf %312, %311 : vector<16x64xf32>
    %cst_150 = arith.constant 4.471500e-02 : f32
    %314 = vector.broadcast %cst_150 : f32 to vector<16x64xf32>
    %315 = arith.mulf %314, %311 : vector<16x64xf32>
    %316 = arith.mulf %315, %311 : vector<16x64xf32>
    %317 = arith.mulf %316, %311 : vector<16x64xf32>
    %318 = arith.addf %311, %317 : vector<16x64xf32>
    %cst_151 = arith.constant 0.797884583 : f32
    %319 = vector.broadcast %cst_151 : f32 to vector<16x64xf32>
    %320 = arith.mulf %319, %318 : vector<16x64xf32>
    %321 = math.tanh %320 : vector<16x64xf32>
    %cst_152 = arith.constant 1.000000e+00 : f32
    %322 = vector.broadcast %cst_152 : f32 to vector<16x64xf32>
    %323 = arith.addf %322, %321 : vector<16x64xf32>
    %324 = arith.mulf %313, %323 : vector<16x64xf32>
    %cst_153 = arith.constant dense<0.000000e+00> : vector<16x32xf32>
    %325 = tpu.matmul %324, %229, %cst_153 {dimension_numbers = #tpu.dot_dimension_numbers<[1], [0], [0], [1], [0, 0, 1, 1], [], []>} : vector<16x64xf32>, vector<64x32xf32>, vector<16x32xf32> -> vector<16x32xf32>
    %c17 = arith.constant 17 : index
    %c0_154 = arith.constant 0 : index
    %326 = vector.load %arg5[%c17, %c0_154] : memref<20x128xf32, #tpu.memory_space<vmem>>, vector<1x32xf32>
    %327 = vector.broadcast %326 : vector<1x32xf32> to vector<16x32xf32>
    %328 = arith.addf %325, %327 : vector<16x32xf32>
    %329 = arith.addf %307, %328 : vector<16x32xf32>
    %cst_155 = arith.constant dense<0.000000e+00> : vector<16xf32>
    %330 = vector.multi_reduction <add>, %329, %cst_155 [1] : vector<16x32xf32> to vector<16xf32>
    %331 = vector.shape_cast %330 : vector<16xf32> to vector<16x1xf32>
    %cst_156 = arith.constant 3.200000e+01 : f32
    %332 = vector.broadcast %cst_156 : f32 to vector<16x1xf32>
    %333 = arith.divf %331, %332 : vector<16x1xf32>
    %334 = vector.broadcast %333 : vector<16x1xf32> to vector<16x32xf32>
    %335 = arith.subf %329, %334 : vector<16x32xf32>
    %336 = arith.mulf %335, %335 : vector<16x32xf32>
    %cst_157 = arith.constant dense<0.000000e+00> : vector<16xf32>
    %337 = vector.multi_reduction <add>, %336, %cst_157 [1] : vector<16x32xf32> to vector<16xf32>
    %338 = vector.shape_cast %337 : vector<16xf32> to vector<16x1xf32>
    %cst_158 = arith.constant 3.200000e+01 : f32
    %339 = vector.broadcast %cst_158 : f32 to vector<16x1xf32>
    %340 = arith.divf %338, %339 : vector<16x1xf32>
    %341 = vector.broadcast %333 : vector<16x1xf32> to vector<16x32xf32>
    %342 = arith.subf %329, %341 : vector<16x32xf32>
    %cst_159 = arith.constant 9.99999996E-13 : f32
    %343 = vector.broadcast %cst_159 : f32 to vector<16x1xf32>
    %344 = arith.addf %340, %343 : vector<16x1xf32>
    %345 = math.rsqrt %344 : vector<16x1xf32>
    %346 = vector.broadcast %345 : vector<16x1xf32> to vector<16x32xf32>
    %347 = arith.mulf %342, %346 : vector<16x32xf32>
    %c18 = arith.constant 18 : index
    %c0_160 = arith.constant 0 : index
    %348 = vector.load %arg5[%c18, %c0_160] : memref<20x128xf32, #tpu.memory_space<vmem>>, vector<1x32xf32>
    %349 = vector.broadcast %348 : vector<1x32xf32> to vector<16x32xf32>
    %350 = arith.mulf %347, %349 : vector<16x32xf32>
    %c19 = arith.constant 19 : index
    %c0_161 = arith.constant 0 : index
    %351 = vector.load %arg5[%c19, %c0_161] : memref<20x128xf32, #tpu.memory_space<vmem>>, vector<1x32xf32>
    %352 = vector.broadcast %351 : vector<1x32xf32> to vector<16x32xf32>
    %353 = arith.addf %350, %352 : vector<16x32xf32>
    %354 = vector.extract_strided_slice %353 {offsets = [0, 0], sizes = [1, 32], strides = [1, 1]} : vector<16x32xf32> to vector<1x32xf32>
    %355 = vector.extract_strided_slice %353 {offsets = [8, 0], sizes = [1, 32], strides = [1, 1]} : vector<16x32xf32> to vector<1x32xf32>
    %356 = tpu.concatenate %354, %355 in 0 : vector<1x32xf32>, vector<1x32xf32> -> vector<2x32xf32>
    %c0_162 = arith.constant 0 : index
    %c0_163 = arith.constant 0 : index
    %357 = vector.load %arg8[%c0_162, %c0_163] : memref<32x160xf32, #tpu.memory_space<vmem>>, vector<32x32xf32>
    %c0_164 = arith.constant 0 : index
    %c32 = arith.constant 32 : index
    %358 = vector.load %arg8[%c0_164, %c32] : memref<32x160xf32, #tpu.memory_space<vmem>>, vector<32x128xf32>
    %cst_165 = arith.constant dense<0.000000e+00> : vector<2x32xf32>
    %359 = tpu.matmul %356, %357, %cst_165 {dimension_numbers = #tpu.dot_dimension_numbers<[1], [0], [0], [1], [0, 0, 1, 1], [], []>} : vector<2x32xf32>, vector<32x32xf32>, vector<2x32xf32> -> vector<2x32xf32>
    %c2_166 = arith.constant 2 : index
    %c0_167 = arith.constant 0 : index
    %360 = vector.load %arg5[%c2_166, %c0_167] : memref<20x128xf32, #tpu.memory_space<vmem>>, vector<1x32xf32>
    %361 = vector.broadcast %360 : vector<1x32xf32> to vector<2x32xf32>
    %362 = arith.addf %359, %361 : vector<2x32xf32>
    %363 = math.tanh %362 : vector<2x32xf32>
    %cst_168 = arith.constant dense<0.000000e+00> : vector<2x128xf32>
    %364 = tpu.matmul %363, %358, %cst_168 {dimension_numbers = #tpu.dot_dimension_numbers<[1], [0], [0], [1], [0, 0, 1, 1], [], []>} : vector<2x32xf32>, vector<32x128xf32>, vector<2x128xf32> -> vector<2x128xf32>
    %c3_169 = arith.constant 3 : index
    %c0_170 = arith.constant 0 : index
    %365 = vector.load %arg5[%c3_169, %c0_170] : memref<20x128xf32, #tpu.memory_space<vmem>>, vector<1x128xf32>
    %366 = vector.broadcast %365 : vector<1x128xf32> to vector<2x128xf32>
    %367 = arith.addf %364, %366 : vector<2x128xf32>
    %cst_171 = arith.constant 0.000000e+00 : f32
    %368 = vector.broadcast %cst_171 : f32 to vector<2x128xf32>
    %369 = arith.cmpf oge, %367, %368 : vector<2x128xf32>
    %cst_172 = arith.constant 1.000000e-01 : f32
    %370 = vector.broadcast %cst_172 : f32 to vector<2x128xf32>
    %371 = arith.mulf %370, %367 : vector<2x128xf32>
    %372 = arith.select %369, %367, %371 : vector<2x128xi1>, vector<2x128xf32>
    %c0_173 = arith.constant 0 : index
    %c0_174 = arith.constant 0 : index
    %373 = vector.load %arg9[%c0_173, %c0_174] : memref<2x128xf32, #tpu.memory_space<vmem>>, vector<2x128xf32>
    tpu.vector_store %arg9[%c0_173, %c0_174], %372 {strides = array<i32>} : memref<2x128xf32, #tpu.memory_space<vmem>>, vector<2x128xf32>,
    return
  }
  func.func @transform_0(%arg0: i32, %arg1: memref<16xi32, #tpu.memory_space<smem>>) -> (i32, i32) {
    %c0_i32 = arith.constant 0 : i32
    %c0_i32_0 = arith.constant 0 : i32
    %c0_i32_1 = arith.constant 0 : i32
    return %c0_i32, %c0_i32_0 : i32, i32
  }
  func.func @transform_1(%arg0: i32, %arg1: memref<16xi32, #tpu.memory_space<smem>>) -> (i32, i32) {
    %c0_i32 = arith.constant 0 : i32
    %c0_i32_0 = arith.constant 0 : i32
    %c0_i32_1 = arith.constant 0 : i32
    return %c0_i32, %c0_i32_0 : i32, i32
  }
  func.func @transform_2(%arg0: i32, %arg1: memref<16xi32, #tpu.memory_space<smem>>) -> (i32, i32) {
    %c0_i32 = arith.constant 0 : i32
    %c0_i32_0 = arith.constant 0 : i32
    %c0_i32_1 = arith.constant 0 : i32
    return %c0_i32, %c0_i32_0 : i32, i32
  }
  func.func @transform_3(%arg0: i32, %arg1: memref<16xi32, #tpu.memory_space<smem>>) -> (i32, i32) {
    %c0_i32 = arith.constant 0 : i32
    %c0_i32_0 = arith.constant 0 : i32
    %c0_i32_1 = arith.constant 0 : i32
    return %c0_i32, %c0_i32_0 : i32, i32
  }
  func.func @transform_4(%arg0: i32, %arg1: memref<16xi32, #tpu.memory_space<smem>>) -> (i32, i32, i32) {
    %c0_i32 = arith.constant 0 : i32
    %c0_i32_0 = arith.constant 0 : i32
    %c0_i32_1 = arith.constant 0 : i32
    %c0_i32_2 = arith.constant 0 : i32
    return %c0_i32, %c0_i32_0, %c0_i32_1 : i32, i32, i32
  }
  func.func @transform_5(%arg0: i32, %arg1: memref<16xi32, #tpu.memory_space<smem>>) -> (i32, i32, i32) {
    %c0_i32 = arith.constant 0 : i32
    %c0_i32_0 = arith.constant 0 : i32
    %c0_i32_1 = arith.constant 0 : i32
    %c0_i32_2 = arith.constant 0 : i32
    return %c0_i32, %c0_i32_0, %c0_i32_1 : i32, i32, i32
  }
  func.func @transform_6(%arg0: i32, %arg1: memref<16xi32, #tpu.memory_space<smem>>) -> (i32, i32) {
    %c0_i32 = arith.constant 0 : i32
    %c0_i32_0 = arith.constant 0 : i32
    %c0_i32_1 = arith.constant 0 : i32
    return %c0_i32, %c0_i32_0 : i32, i32
  }
  func.func @transform_7(%arg0: i32, %arg1: memref<16xi32, #tpu.memory_space<smem>>) -> (i32, i32) {
    %c0_i32 = arith.constant 0 : i32
    %c0_i32_0 = arith.constant 0 : i32
    %c0_i32_1 = arith.constant 0 : i32
    return %c0_i32, %c0_i32_0 : i32, i32
  }
}

</mosaic_0001>

<bundles_post_ra>
// kernel: minilm_sentence_classification.1
= control target key start
LH: loop header
LB: loop body
LE: loop exit
PB: predicated region body
PF: predicated region fallthrough
CT: control target
= control target key end

     0   :  { %s3386_s0 = inlined_call_operand.vmem [shape: s32[16], index: 0, kind: input, shape index: {}]   ;;  %s3387_s1 = inlined_call_operand.vmem [shape: f32[100,32], index: 1, kind: input, shape index: {}]   ;;  %s3388_s2 = inlined_call_operand.vmem [shape: f32[16,32], index: 2, kind: input, shape index: {}]   ;;  %s3389_s3 = inlined_call_operand.vmem [shape: f32[16,16], index: 3, kind: input, shape index: {}]   ;;  %s3390_s4 = inlined_call_operand.vmem [shape: f32[20,128], index: 4, kind: input, shape index: {}]   ;;  %s3391_s5 = inlined_call_operand.vmem [shape: f32[2,32,192], index: 5, kind: input, shape index: {}]   ;;  %s3392_s6 = inlined_call_operand.vmem [shape: f32[2,64,32], index: 6, kind: input, shape index: {}]   ;;  %s3393_s7 = inlined_call_operand.vmem [shape: f32[32,160], index: 7, kind: input, shape index: {}]   ;;  %s3394_s8 = inlined_call_operand.hbm [shape: f32[2,128], index: 8, kind: output, shape index: {}]  }
   0x1   :  { %s13_s29 = sshll.u32 %s3386_s0, 4  ;;  %s14_s29 = int_to_ptr.vmem [resolvable:$true] %s13_s29 }
   0x2   :  { %s2783_s30 = scalar_lea.vmem %s14_s29, 16  ;;  %p2788_p1 = scmp.lt.s32.totalorder %s14_s29, %s14_s29 }
   0x3   :  { %p2784_p0 = scmp.ne.s32.totalorder %s14_s29, %s2783_s30  ;;  %p2789_p2 = scmp.lt.s32.totalorder %s2783_s30, %s2783_s30 }
   0x5   :  { %p2790_p3 = por %p2789_p2, %p2788_p1 }
   0x7   :  { %p2791_p4 = pnand %p2790_p3, %p2784_p0 }
   0x9   :  { %2794 = shalt.err (!%p2791_p4)  }
   0xa   :  { %s2819_s9 = smov [#allocation4]  }
   0xb   :  { %16 = dma.vmem_to_smem %s14_s29, 16, %s2819_s9, [#allocation3] }
   0xc   :  { %2815 = dma.done.wait [#allocation3], 16 }
   0xd   :  { %2816 = vsyncadd [#allocation3], 4294967280 }
   0xe   :  { %18 = sfence }
   0xf   :  { %s34_s10 = sld [smem:[#allocation4]] }
  0x10   :  { %s2324_s11 = sld [smem:[#allocation4 + $0x1]] }
  0x11   :  { %19 = vsyncpa [#allocation6], 0  ;;  %s2325_s12 = sld [smem:[#allocation4 + $0x2]]  ;;  %vm37_vm0 = vcmask 253952   ;;  %v101_v13 = vld [vmem:[%s3388_s2] sm:$0xff]  ;;  %vm105_vm1 = vcmask 261120  }
  0x12   :  { %s2326_s13 = sld [smem:[#allocation4 + $0x3]]  ;;  %v102_v20 = vld [vmem:[%s3388_s2 + $0x8] sm:$0xff]  ;;  %v2954_v34 = vld [vmem:[%s3391_s5 + $0x30] sm:$0xff]  ;;  %v2959_v35 = vld [vmem:[%s3391_s5 + $0x20] sm:$0xff]  ;;  %vm257_vm2 = vcmask 130048   ;;  %vm994_vm3 = vcmask 523264  }
  0x13   :  { %s2327_s14 = sld [smem:[#allocation4 + $0x4]]  ;;  %2523 = vmatprep.subr.mxu0 %v2954_v34  ;;  %v2966_v36 = vld [vmem:[%s3391_s5 + $0x10] sm:$0xff]  ;;  %v2975_v37 = vld [vmem:[%s3391_s5] sm:$0xff]  ;;  %v3015_v62 = vld [vmem:[%s3389_s3 + $0x8] sm:$0xff]  ;;  %vm2827_vm4 = vmmov 0   ;;  %vm2208_vm5 = vcmask 785408  }
  0x14   :  { %s2328_s0 = sld [smem:[#allocation4 + $0x5]]  ;;  %2524 = vmatpush3.msra.mxu0 %v2954_v34  ;;  %v2339_v45 = vld [vmem:[%s3390_s4] ss:$0 sm:$0xff]  ;;  %v2340_v47 = vld [vmem:[%s3390_s4 + $0x1] ss:$0 sm:$0xff]  ;;  %vm2090_vm6 = vcmask 1040384  }
  0x15   :  { %s35_s17 = scalar_lea.vmem %s3387_s1, %s34_s10  ;;  %s2329_s18 = sld [smem:[#allocation4 + $0x6]]  ;;  %2525 = vmatprep.subr.mxu0 %v2959_v35  ;;  %v2341_v54 = vld [vmem:[%s3390_s4 + $0x4] ss:$0 sm:$0xff] }
  0x16   :  { %v36_v0 = vld [vmem:[%s35_s17] sm:$0x1]  ;;  %s40_s21 = scalar_lea.vmem %s3387_s1, %s2324_s11  ;;  %s2330_s22 = sld [smem:[#allocation4 + $0x7]]  ;;  %2526 = vmatpush3.msra.mxu0 %v2959_v35 }
  0x17   :  { %38 = vst.msk [vmem:[#allocation2] sm:$0x1] %vm37_vm0, %v36_v0  ;;  %v41_v1 = vld [vmem:[%s40_s21] sm:$0x1]  ;;  %s44_s25 = scalar_lea.vmem %s3387_s1, %s2325_s12  ;;  %s2331_s26 = sld [smem:[#allocation4 + $0x8]]  ;;  %2527 = vmatprep.subr.mxu0 %v2966_v36 }
  0x18   :  { %42 = vst.msk [vmem:[#allocation2 + $0x1] sm:$0x1] %vm37_vm0, %v41_v1  ;;  %v45_v2 = vld [vmem:[%s44_s25] sm:$0x1]  ;;  %s48_s29 = scalar_lea.vmem %s3387_s1, %s2326_s13  ;;  %s2332_s30 = sld [smem:[#allocation4 + $0x9]]  ;;  %2528 = vmatpush3.msra.mxu0 %v2966_v36 }
  0x19   :  { %46 = vst.msk [vmem:[#allocation2 + $0x2] sm:$0x1] %vm37_vm0, %v45_v2  ;;  %v49_v3 = vld [vmem:[%s48_s29] sm:$0x1]  ;;  %s52_s11 = scalar_lea.vmem %s3387_s1, %s2327_s14  ;;  %s2333_s15 = sld [smem:[#allocation4 + $0xa]]  ;;  %2529 = vmatprep.subr.mxu0 %v2975_v37 }
  0x1a   :  { %50 = vst.msk [vmem:[#allocation2 + $0x3] sm:$0x1] %vm37_vm0, %v49_v3  ;;  %v53_v4 = vld [vmem:[%s52_s11] sm:$0x1]  ;;  %s56_s17 = scalar_lea.vmem %s3387_s1, %s2328_s0  ;;  %s2334_s19 = sld [smem:[#allocation4 + $0xb]]  ;;  %2530 = vmatpush3.msra.mxu0 %v2975_v37 }
  0x1b   :  { %54 = vst.msk [vmem:[#allocation2 + $0x4] sm:$0x1] %vm37_vm0, %v53_v4  ;;  %v57_v5 = vld [vmem:[%s56_s17] sm:$0x1]  ;;  %s60_s21 = scalar_lea.vmem %s3387_s1, %s2329_s18  ;;  %s2335_s23 = sld [smem:[#allocation4 + $0xc]] }
  0x1c   :  { %58 = vst.msk [vmem:[#allocation2 + $0x5] sm:$0x1] %vm37_vm0, %v57_v5  ;;  %v61_v6 = vld [vmem:[%s60_s21] sm:$0x1]  ;;  %s64_s25 = scalar_lea.vmem %s3387_s1, %s2330_s22  ;;  %s2336_s27 = sld [smem:[#allocation4 + $0xd]] }
  0x1d   :  { %62 = vst.msk [vmem:[#allocation2 + $0x6] sm:$0x1] %vm37_vm0, %v61_v6  ;;  %v65_v7 = vld [vmem:[%s64_s25] sm:$0x1]  ;;  %s68_s29 = scalar_lea.vmem %s3387_s1, %s2331_s26  ;;  %s2337_s9 = sld [smem:[#allocation4 + $0xe]] }
  0x1e   :  { %66 = vst.msk [vmem:[#allocation2 + $0x7] sm:$0x1] %vm37_vm0, %v65_v7  ;;  %v69_v8 = vld [vmem:[%s68_s29] sm:$0x1]  ;;  %s72_s11 = scalar_lea.vmem %s3387_s1, %s2332_s30  ;;  %s2338_s12 = sld [smem:[#allocation4 + $0xf]] }
  0x1f   :  { %70 = vst.msk [vmem:[#allocation2 + $0x8] sm:$0x1] %vm37_vm0, %v69_v8  ;;  %v73_v9 = vld [vmem:[%s72_s11] sm:$0x1]  ;;  %s76_s17 = scalar_lea.vmem %s3387_s1, %s2333_s15  ;;  %s2824_s10 = smov 48  }
  0x20   :  { %74 = vst.msk [vmem:[#allocation2 + $0x9] sm:$0x1] %vm37_vm0, %v73_v9  ;;  %v77_v10 = vld [vmem:[%s76_s17] sm:$0x1]  ;;  %s80_s20 = scalar_lea.vmem %s3387_s1, %s2334_s19 }
  0x21   :  { %78 = vst.msk [vmem:[#allocation2 + $0xa] sm:$0x1] %vm37_vm0, %v77_v10  ;;  %v81_v11 = vld [vmem:[%s80_s20] sm:$0x1]  ;;  %s84_s14 = scalar_lea.vmem %s3387_s1, %s2335_s23  ;;  %s2823_s23 = smov 112  }
  0x22   :  { %82 = vst.msk [vmem:[#allocation2 + $0xb] sm:$0x1] %vm37_vm0, %v81_v11  ;;  %v85_v12 = vld [vmem:[%s84_s14] sm:$0x1]  ;;  %s88_s15 = scalar_lea.vmem %s3387_s1, %s2336_s27 }
  0x23   :  { %86 = vst.msk [vmem:[#allocation2 + $0xc] sm:$0x1] %vm37_vm0, %v85_v12  ;;  %v89_v14 = vld [vmem:[%s88_s15] sm:$0x1]  ;;  %s92_s18 = scalar_lea.vmem %s3387_s1, %s2337_s9  ;;  %s2820_s15 = smov 96  }
  0x24   :  { %90 = vst.msk [vmem:[#allocation2 + $0xd] sm:$0x1] %vm37_vm0, %v89_v14  ;;  %v93_v15 = vld [vmem:[%s92_s18] sm:$0x1]  ;;  %s96_s11 = scalar_lea.vmem %s3387_s1, %s2338_s12  ;;  %s2822_s18 = smov 80  }
  0x25   :  { %v99_v16 = vld [vmem:[#allocation2] sm:$0xff]  ;;  %94 = vst.msk [vmem:[#allocation2 + $0xe] sm:$0x1] %vm37_vm0, %v93_v15 }
  0x26   :  { %v97_v17 = vld [vmem:[%s96_s11] sm:$0x1]  ;;  %v103_v18 = vadd.f32 %v101_v13, %v99_v16  ;;  %s2825_s11 = smov 32  }
  0x27   :  { %98 = vst.msk [vmem:[#allocation2 + $0xf] sm:$0x1] %vm37_vm0, %v97_v17  ;;  %v3020_v1 = vld [vmem:[%s3389_s3] sm:$0xff]  ;;  %s2821_s3 = smov 64  }
  0x28   :  { %v106_v19 = vsel %vm105_vm1, %v103_v18, 0.0 }
  0x29   :  { %107 = vadd.xlane.f32.xlu0 %v106_v19 }
  0x2e   :  { %v100_v21 = vld [vmem:[#allocation2 + $0x8] sm:$0xff] }
  0x2f   :  { %v104_v22 = vadd.f32 %v102_v20, %v100_v21 }
  0x31   :  { %v109_v23 = vsel %vm105_vm1, %v104_v22, 0.0 }
  0x32   :  { %110 = vadd.xlane.f32.xlu0 %v109_v23 }
  0xb2   :  { %v108_v24 = vpop.xlane.xlu0 %107 }
  0xb3   :  { %v113_v25 = vmul.f32 0.03125, %v108_v24 }
  0xb5   :  { %v115_v26 = vsub.f32 %v103_v18, %v113_v25 }
  0xb7   :  { %v117_v27 = vmul.f32 %v115_v26, %v115_v26 }
  0xb9   :  { %v119_v28 = vsel %vm105_vm1, %v117_v27, 0.0 }
  0xba   :  { %120 = vadd.xlane.f32.xlu1 %v119_v28 }
  0xbb   :  { %v111_v29 = vpop.xlane.xlu0 %110 }
  0xbc   :  { %v114_v30 = vmul.f32 0.03125, %v111_v29 }
  0xbe   :  { %v116_v31 = vsub.f32 %v104_v22, %v114_v30 }
  0xc0   :  { %v118_v32 = vmul.f32 %v116_v31, %v116_v31 }
  0xc2   :  { %v122_v33 = vsel %vm105_vm1, %v118_v32, 0.0 }
  0xc3   :  { %123 = vadd.xlane.f32.xlu1 %v122_v33 }
 0x143   :  { %v121_v38 = vpop.xlane.xlu1 %120 }
 0x144   :  { %v125_v39 = vmul.f32 0.03125, %v121_v38 }
 0x146   :  { %v127_v40 = vadd.f32 1e-12, %v125_v39 }
 0x148   :  { %2721 = vrsqrt.f32 %v127_v40 }
 0x14c   :  { %v124_v41 = vpop.xlane.xlu1 %123 }
 0x14d   :  { %v126_v42 = vmul.f32 0.03125, %v124_v41 }
 0x14f   :  { %v128_v43 = vadd.f32 1e-12, %v126_v42 }
 0x151   :  { %2723 = vrsqrt.f32 %v128_v43 }
 0x155   :  { %v2722_v44 = vpop.eup %2721 }
 0x156   :  { %v131_v46 = vmul.f32 %v2722_v44, %v115_v26 }
 0x158   :  { %v138_v48 = vmul.f32 %v2339_v45, %v131_v46 }
 0x15a   :  { %v2985_v49 = vadd.f32 %v2340_v47, %v138_v48 }
 0x15c   :  { %2531 = vmatprep.mubr.msk.f32.mxu0 %vm105_vm1, %v2985_v49 }
 0x15e   :  { %v2724_v50 = vpop.eup %2723 }
 0x15f   :  { %v132_v51 = vmul.f32 %v2724_v50, %v116_v31 }
 0x161   :  { %v139_v52 = vmul.f32 %v2339_v45, %v132_v51 }
 0x163   :  { %v2989_v53 = vadd.f32 %v2340_v47, %v139_v52 }
 0x165   :  { %2532 = vmatmul.mubr.msk.f32.vlgmr.msra.gmra.mxu0 %vm105_vm1, %v2989_v53 }
 0x225   :  { %v2533_v55 = vpop.f32.mrf.mxu0 }
 0x226   :  { %v2996_v56 = vadd.f32 %v2533_v55, %v2341_v54 }
 0x227   :  { %v242_v57 = vpop.f32.mrf.mxu0 }
 0x228   :  { %v2998_v58 = vadd.f32 %v2341_v54, %v242_v57  ;;  %255 = vrot.lane.b32.xlu0 %v2996_v56, %s2820_s15 }
 0x22a   :  { %253 = vrot.lane.b32.xlu1 %v2998_v58, %s2820_s15  ;;  %2538 = vmatprep.mubr.msk.f32.mxu1 %vm257_vm2, %v2998_v58 }
 0x29a   :  { %v256_v59 = vpop.permute.xlu0 %255 }
 0x29b   :  { %2534 = vmatprep.subr.msk.mxu1 %vm257_vm2, %v256_v59 }
 0x29c   :  { %2535 = vmatpush3.xpose.msk.msra.mxu1 %vm257_vm2, %v256_v59  ;;  %v254_v60 = vpop.permute.xlu1 %253 }
 0x29d   :  { %2536 = vmatprep.subr.msk.mxu1 %vm257_vm2, %v254_v60 }
 0x2a0   :  { %2537 = vmatpush3.xpose.msk.msra.mxu1 %vm257_vm2, %v254_v60 }
 0x2a3   :  { %2539 = vmatmul.mubr.msk.f32.vlgmr.msra.gmra.mxu1 %vm257_vm2, %v2996_v56 }
 0x363   :  { %v2540_v61 = vpop.f32.mrf.mxu1 }
 0x364   :  { %v342_v63 = vmul.f32 0.25, %v2540_v61 }
 0x365   :  { %v332_v0 = vpop.f32.mrf.mxu1 }
 0x366   :  { %v341_v2 = vmul.f32 0.25, %v332_v0  ;;  %v344_v3 = vadd.f32 %v342_v63, %v3015_v62 }
 0x368   :  { %v348_v4 = vsel %vm257_vm2, %v344_v3, -inf  ;;  %v343_v5 = vadd.f32 %v341_v2, %v3020_v1 }
 0x369   :  { %349 = vmax.xlane.f32.xlu0 %v348_v4 }
 0x36a   :  { %v345_v6 = vsel %vm257_vm2, %v343_v5, -inf }
 0x36b   :  { %346 = vmax.xlane.f32.xlu1 %v345_v6 }
 0x3f2   :  { %v350_v7 = vpop.xlane.xlu0 %349 }
 0x3f3   :  { %v352_v8 = vsub.f32 %v344_v3, %v350_v7 }
 0x3f4   :  { %v347_v9 = vpop.xlane.xlu1 %346 }
 0x3f5   :  { %v355_v10 = vmul.f32 1.442695, %v352_v8  ;;  %v351_v11 = vsub.f32 %v343_v5, %v347_v9  ;;  %v2360_v5 = vld [vmem:[%s3390_s4 + $0x5] ss:$0 sm:$0xff] }
 0x3f7   :  { %2725 = vpow2.f32 %v355_v10  ;;  %v353_v12 = vmul.f32 1.442695, %v351_v11 }
 0x3f9   :  { %2727 = vpow2.f32 %v353_v12 }
 0x404   :  { %v2726_v13 = vpop.eup %2725 }
 0x405   :  { %v360_v14 = vsel %vm257_vm2, %v2726_v13, 0.0 }
 0x406   :  { %v2728_v15 = vpop.eup %2727  ;;  %361 = vadd.xlane.f32.xlu1 %v360_v14 }
 0x407   :  { %v357_v16 = vsel %vm257_vm2, %v2728_v15, 0.0 }
 0x408   :  { %358 = vadd.xlane.f32.xlu0 %v357_v16 }
 0x417   :  { %367 = vrot.lane.b32.xlu1 %v2998_v58, %s2821_s3 }
 0x41b   :  { %460 = vrot.lane.b32.xlu1 %v2996_v56, %s2822_s18 }
 0x41e   :  { %369 = vrot.lane.b32.xlu0 %v2996_v56, %s2821_s3 }
 0x41f   :  { %458 = vrot.lane.b32.xlu1 %v2998_v58, %s2822_s18 }
 0x422   :  { %454 = vrot.lane.b32.xlu0 %v2998_v58, %s2823_s23 }
 0x423   :  { %456 = vrot.lane.b32.xlu1 %v2996_v56, %s2823_s23 }
 0x48f   :  { %v362_v17 = vpop.xlane.xlu1 %361 }
 0x490   :  { %2729 = vrcp.f32 %v362_v17 }
 0x491   :  { %v359_v18 = vpop.xlane.xlu0 %358 }
 0x492   :  { %2731 = vrcp.f32 %v359_v18 }
 0x493   :  { %v368_v19 = vpop.permute.xlu1 %367 }
 0x495   :  { %v370_v20 = vpop.permute.xlu0 %369 }
 0x496   :  { %2541 = vmatprep.subr.mxu1 %v370_v20 }
 0x497   :  { %2542 = vmatpush3.msra.mxu1 %v370_v20  ;;  %v461_v21 = vpop.permute.xlu1 %460 }
 0x498   :  { %2543 = vmatprep.subr.mxu1 %v368_v19 }
 0x499   :  { %2544 = vmatpush3.msra.mxu1 %v368_v19  ;;  %v455_v26 = vpop.permute.xlu0 %454 }
 0x49a   :  { %2548 = vmatprep.subr.msk.mxu1 %vm257_vm2, %v461_v21 }
 0x49b   :  { %v459_v27 = vpop.permute.xlu1 %458 }
 0x49d   :  { %v2730_v22 = vpop.eup %2729 }
 0x49e   :  { %v366_v25 = vmul.f32 %v2730_v22, %v2726_v13 }
 0x49f   :  { %v2732_v23 = vpop.eup %2731  ;;  %v457_v28 = vpop.permute.xlu1 %456 }
 0x4a0   :  { %v365_v24 = vmul.f32 %v2732_v23, %v2728_v15 }
 0x4a2   :  { %2545 = vmatprep.mubr.msk.f32.mxu1 %vm257_vm2, %v365_v24 }
 0x4a3   :  { %2546 = vmatmul.mubr.msk.f32.vlgmr.msra.gmra.mxu1 %vm257_vm2, %v366_v25  ;;  %v154_v25 = vld [vmem:[%s3391_s5 + $0x28] sm:$0xff] }
 0x4a4   :  { %2549 = vmatpush3.xpose.msk.msra.mxu1 %vm257_vm2, %v461_v21  ;;  %2552 = vmatprep.mubr.msk.f32.mxu1 %vm257_vm2, %v455_v26  ;;  %v152_v26 = vld [vmem:[%s3391_s5 + $0x18] sm:$0xff] }
 0x4a5   :  { %2550 = vmatprep.subr.msk.mxu1 %vm257_vm2, %v459_v27 }
 0x4a8   :  { %2551 = vmatpush3.xpose.msk.msra.mxu1 %vm257_vm2, %v459_v27  ;;  %v150_v27 = vld [vmem:[%s3391_s5 + $0x8] sm:$0xff] }
 0x4ab   :  { %2553 = vmatmul.mubr.msk.f32.vlgmr.msra.gmra.mxu1 %vm257_vm2, %v457_v28 }
 0x563   :  { %v2547_v29 = vpop.f32.mrf.mxu1 }
 0x565   :  { %v445_v30 = vpop.f32.mrf.mxu1 }
 0x566   :  { %2573 = vmatprep.mubr.msk.f32.mxu1 %vm257_vm2, %v445_v30 }
 0x56b   :  { %v2554_v31 = vpop.f32.mrf.mxu1 }
 0x56c   :  { %v546_v32 = vmul.f32 0.25, %v2554_v31 }
 0x56d   :  { %v536_v33 = vpop.f32.mrf.mxu1 }
 0x56e   :  { %v545_v38 = vmul.f32 0.25, %v536_v33  ;;  %v548_v39 = vadd.f32 %v546_v32, %v3015_v62 }
 0x570   :  { %v552_v40 = vsel %vm257_vm2, %v548_v39, -inf  ;;  %v547_v41 = vadd.f32 %v545_v38, %v3020_v1 }
 0x571   :  { %553 = vmax.xlane.f32.xlu1 %v552_v40 }
 0x572   :  { %v549_v42 = vsel %vm257_vm2, %v547_v41, -inf }
 0x573   :  { %550 = vmax.xlane.f32.xlu0 %v549_v42 }
 0x582   :  { %571 = vrot.lane.b32.xlu1 %v2998_v58, %s2824_s10 }
 0x586   :  { %662 = vrot.lane.b32.xlu1 %v2954_v34, %s2825_s11 }
 0x58a   :  { %751 = vrot.lane.b32.xlu1 %v2966_v36, %s2825_s11 }
 0x58e   :  { %749 = vrot.lane.b32.xlu1 %v2975_v37, %s2825_s11 }
 0x5fa   :  { %v554_v43 = vpop.xlane.xlu1 %553 }
 0x5fb   :  { %v556_v44 = vsub.f32 %v548_v39, %v554_v43  ;;  %v2361_v39 = vld [vmem:[%s3390_s4 + $0x6] ss:$0 sm:$0xff] }
 0x5fc   :  { %v551_v45 = vpop.xlane.xlu0 %550 }
 0x5fd   :  { %v559_v46 = vmul.f32 1.442695, %v556_v44  ;;  %v555_v47 = vsub.f32 %v547_v41, %v551_v45  ;;  %v2362_v41 = vld [vmem:[%s3390_s4 + $0x7] ss:$0 sm:$0xff] }
 0x5fe   :  { %v572_v48 = vpop.permute.xlu1 %571 }
 0x5ff   :  { %2733 = vpow2.f32 %v559_v46  ;;  %v557_v50 = vmul.f32 1.442695, %v555_v47 }
 0x601   :  { %2735 = vpow2.f32 %v557_v50  ;;  %v163_v50 = vld [vmem:[%s3392_s6 + $0x30] sm:$0xff] }
 0x602   :  { %v663_v51 = vpop.permute.xlu1 %662 }
 0x606   :  { %v752_v52 = vpop.permute.xlu1 %751 }
 0x607   :  { %2569 = vmatprep.subr.mxu1 %v752_v52 }
 0x608   :  { %2570 = vmatpush3.msra.mxu1 %v752_v52  ;;  %v161_v52 = vld [vmem:[%s3392_s6 + $0x20] sm:$0xff] }
 0x60a   :  { %v750_v34 = vpop.permute.xlu1 %749 }
 0x60b   :  { %2571 = vmatprep.subr.mxu1 %v750_v34 }
 0x60c   :  { %v2734_v54 = vpop.eup %2733  ;;  %2572 = vmatpush3.msra.mxu1 %v750_v34  ;;  %v160_v34 = vld [vmem:[%s3392_s6 + $0x18] sm:$0xff] }
 0x60d   :  { %2574 = vmatmul.mubr.msk.f32.vlgmr.msra.gmra.mxu1 %vm257_vm2, %v2547_v29  ;;  %v564_v36 = vsel %vm257_vm2, %v2734_v54, 0.0 }
 0x60e   :  { %v2736_v37 = vpop.eup %2735  ;;  %565 = vadd.xlane.f32.xlu0 %v564_v36  ;;  %v158_v36 = vld [vmem:[%s3392_s6 + $0x8] sm:$0xff] }
 0x60f   :  { %v561_v55 = vsel %vm257_vm2, %v2736_v37, 0.0 }
 0x612   :  { %562 = vadd.xlane.f32.xlu0 %v561_v55  ;;  %v2363_v55 = vld [vmem:[%s3390_s4 + $0x8] ss:$0 sm:$0xff] }
 0x628   :  { %573 = vrot.lane.b32.xlu0 %v2996_v56, %s2824_s10 }
 0x62c   :  { %660 = vrot.lane.b32.xlu0 %v2959_v35, %s2825_s11 }
 0x697   :  { %v566_v57 = vpop.xlane.xlu0 %565 }
 0x698   :  { %2737 = vrcp.f32 %v566_v57 }
 0x69b   :  { %v563_v58 = vpop.xlane.xlu0 %562 }
 0x69c   :  { %2739 = vrcp.f32 %v563_v58 }
 0x69f   :  { %v574_v59 = vpop.permute.xlu0 %573 }
 0x6a0   :  { %2555 = vmatprep.subr.mxu0 %v574_v59 }
 0x6a1   :  { %2556 = vmatpush3.msra.mxu0 %v574_v59 }
 0x6a2   :  { %2557 = vmatprep.subr.mxu0 %v572_v48 }
 0x6a3   :  { %2558 = vmatpush3.msra.mxu0 %v572_v48  ;;  %v661_v56 = vpop.permute.xlu0 %660  ;;  %v164_v48 = vld [vmem:[%s3392_s6 + $0x38] sm:$0xff] }
 0x6a4   :  { %2562 = vmatprep.subr.mxu0 %v663_v51  ;;  %2587 = vmatprep.subr.mxu1 %v164_v48 }
 0x6a5   :  { %v2738_v60 = vpop.eup %2737  ;;  %2588 = vmatpush3.msra.mxu1 %v164_v48  ;;  %v2369_v48 = vld [vmem:[%s3390_s4 + $0xa] ss:$0 sm:$0xff] }
 0x6a6   :  { %v570_v0 = vmul.f32 %v2738_v60, %v2734_v54  ;;  %2589 = vmatprep.subr.mxu1 %v163_v50  ;;  %v159_v54 = vld [vmem:[%s3392_s6 + $0x10] sm:$0xff] }
 0x6a7   :  { %2590 = vmatpush3.msra.mxu1 %v163_v50 }
 0x6a9   :  { %v2740_v61 = vpop.eup %2739 }
 0x6aa   :  { %v569_v63 = vmul.f32 %v2740_v61, %v2736_v37  ;;  %v157_v37 = vld [vmem:[%s3392_s6] sm:$0xff] }
 0x6ac   :  { %2559 = vmatprep.mubr.msk.f32.mxu0 %vm257_vm2, %v569_v63 }
 0x6ad   :  { %2560 = vmatmul.mubr.msk.f32.vlgmr.msra.gmra.mxu0 %vm257_vm2, %v570_v0 }
 0x6ae   :  { %2563 = vmatpush3.msra.mxu0 %v663_v51  ;;  %v162_v51 = vld [vmem:[%s3392_s6 + $0x28] sm:$0xff] }
 0x6af   :  { %2564 = vmatprep.subr.mxu0 %v661_v56  ;;  %2591 = vmatprep.subr.mxu1 %v162_v51 }
 0x6b0   :  { %2565 = vmatpush3.msra.mxu0 %v661_v56  ;;  %2592 = vmatpush3.msra.mxu1 %v162_v51 }
 0x6b1   :  { %2593 = vmatprep.subr.mxu1 %v161_v52 }
 0x6b2   :  { %2594 = vmatpush3.msra.mxu1 %v161_v52 }
 0x6b3   :  { %2595 = vmatprep.subr.mxu1 %v160_v34 }
 0x6b4   :  { %2596 = vmatpush3.msra.mxu1 %v160_v34 }
 0x6b5   :  { %2597 = vmatprep.subr.mxu1 %v159_v54 }
 0x6b6   :  { %2598 = vmatpush3.msra.mxu1 %v159_v54  ;;  %v2370_v54 = vld [vmem:[%s3390_s4 + $0xb] ss:$0 sm:$0xff] }
 0x6b7   :  { %2599 = vmatprep.subr.mxu1 %v158_v36 }
 0x6b8   :  { %2600 = vmatpush3.msra.mxu1 %v158_v36 }
 0x6b9   :  { %2601 = vmatprep.subr.mxu1 %v157_v37 }
 0x6ba   :  { %2602 = vmatpush3.msra.mxu1 %v157_v37 }
 0x6cd   :  { %v2575_v3 = vpop.f32.mrf.mxu1 }
 0x6cf   :  { %v827_v7 = vpop.f32.mrf.mxu1 }
 0x76d   :  { %v2561_v35 = vpop.f32.mrf.mxu0 }
 0x76f   :  { %v649_v2 = vpop.f32.mrf.mxu0 }
 0x770   :  { %2566 = vmatprep.mubr.msk.f32.mxu0 %vm257_vm2, %v649_v2 }
 0x771   :  { %2567 = vmatmul.mubr.msk.f32.vlgmr.msra.gmra.mxu0 %vm257_vm2, %v2561_v35 }
 0x831   :  { %v2568_v4 = vpop.f32.mrf.mxu0 }
 0x832   :  { %v833_v6 = vadd.f32 %v2575_v3, %v2568_v4 }
 0x833   :  { %v738_v8 = vpop.f32.mrf.mxu0 }
 0x834   :  { %v842_v9 = vadd.f32 %v2360_v5, %v833_v6  ;;  %v828_v10 = vadd.f32 %v827_v7, %v738_v8 }
 0x836   :  { %v841_v11 = vadd.f32 %v2360_v5, %v828_v10  ;;  %v844_v12 = vadd.f32 %v842_v9, %v2989_v53 }
 0x838   :  { %v848_v13 = vsel %vm105_vm1, %v844_v12, 0.0  ;;  %v843_v14 = vadd.f32 %v841_v11, %v2985_v49  ;;  %v156_v49 = vld [vmem:[%s3391_s5 + $0x38] sm:$0xff] }
 0x839   :  { %849 = vadd.xlane.f32.xlu1 %v848_v13  ;;  %2576 = vmatprep.subr.mxu0 %v156_v49 }
 0x83a   :  { %v845_v15 = vsel %vm105_vm1, %v843_v14, 0.0  ;;  %2577 = vmatpush3.msra.mxu0 %v156_v49 }
 0x83b   :  { %846 = vadd.xlane.f32.xlu0 %v845_v15  ;;  %2578 = vmatprep.subr.mxu0 %v154_v25  ;;  %v2366_v15 = vld [vmem:[%s3390_s4 + $0x9] ss:$0 sm:$0xff] }
 0x83c   :  { %2579 = vmatpush3.msra.mxu0 %v154_v25 }
 0x83d   :  { %2580 = vmatprep.subr.mxu0 %v152_v26 }
 0x83e   :  { %2581 = vmatpush3.msra.mxu0 %v152_v26 }
 0x83f   :  { %2582 = vmatprep.subr.mxu0 %v150_v27 }
 0x840   :  { %2583 = vmatpush3.msra.mxu0 %v150_v27 }
 0x8c2   :  { %v850_v16 = vpop.xlane.xlu1 %849 }
 0x8c3   :  { %v852_v17 = vmul.f32 0.03125, %v850_v16 }
 0x8c4   :  { %v847_v18 = vpop.xlane.xlu0 %846 }
 0x8c5   :  { %v851_v19 = vmul.f32 0.03125, %v847_v18  ;;  %v854_v20 = vsub.f32 %v844_v12, %v852_v17 }
 0x8c7   :  { %v853_v21 = vsub.f32 %v843_v14, %v851_v19  ;;  %v856_v24 = vmul.f32 %v854_v20, %v854_v20 }
 0x8c9   :  { %v855_v22 = vmul.f32 %v853_v21, %v853_v21  ;;  %v860_v53 = vsel %vm105_vm1, %v856_v24, 0.0 }
 0x8cb   :  { %v857_v23 = vsel %vm105_vm1, %v855_v22, 0.0 }
 0x8cc   :  { %858 = vadd.xlane.f32.xlu0 %v857_v23 }
 0x8d0   :  { %861 = vadd.xlane.f32.xlu0 %v860_v53 }
 0x955   :  { %v859_v28 = vpop.xlane.xlu0 %858 }
 0x956   :  { %v863_v29 = vmul.f32 0.03125, %v859_v28 }
 0x958   :  { %v865_v30 = vadd.f32 1e-12, %v863_v29 }
 0x959   :  { %v862_v31 = vpop.xlane.xlu0 %861 }
 0x95a   :  { %2741 = vrsqrt.f32 %v865_v30  ;;  %v864_v32 = vmul.f32 0.03125, %v862_v31 }
 0x95c   :  { %v866_v33 = vadd.f32 1e-12, %v864_v32  ;;  %v3144_v32 = vld [vmem:[%s3391_s5 + $0x70] sm:$0xff] }
 0x95d   :  { %2606 = vmatprep.subr.mxu0 %v3144_v32 }
 0x95e   :  { %2743 = vrsqrt.f32 %v866_v33  ;;  %v3149_v33 = vld [vmem:[%s3391_s5 + $0x60] sm:$0xff] }
 0x967   :  { %v2742_v38 = vpop.eup %2741 }
 0x968   :  { %v869_v40 = vmul.f32 %v2742_v38, %v853_v21  ;;  %v3156_v38 = vld [vmem:[%s3391_s5 + $0x50] sm:$0xff] }
 0x96a   :  { %v876_v42 = vmul.f32 %v2361_v39, %v869_v40 }
 0x96b   :  { %v2744_v43 = vpop.eup %2743 }
 0x96c   :  { %v870_v44 = vmul.f32 %v2744_v43, %v854_v20  ;;  %v3099_v45 = vadd.f32 %v2362_v41, %v876_v42 }
 0x96e   :  { %v877_v46 = vmul.f32 %v2361_v39, %v870_v44  ;;  %2584 = vmatprep.mubr.msk.f32.mxu0 %vm105_vm1, %v3099_v45  ;;  %v3163_v39 = vld [vmem:[%s3391_s5 + $0x40] sm:$0xff] }
 0x970   :  { %v884_v47 = vadd.f32 %v2362_v41, %v877_v46 }
 0x972   :  { %2585 = vmatmul.mubr.msk.f32.vlgmr.msra.gmra.mxu0 %vm105_vm1, %v884_v47 }
 0x973   :  { %2607 = vmatpush3.msra.mxu0 %v3144_v32 }
 0x974   :  { %2608 = vmatprep.subr.mxu0 %v3149_v33 }
 0x975   :  { %2609 = vmatpush3.msra.mxu0 %v3149_v33 }
 0x976   :  { %2610 = vmatprep.subr.mxu0 %v3156_v38 }
 0x977   :  { %2611 = vmatpush3.msra.mxu0 %v3156_v38 }
 0x978   :  { %2612 = vmatprep.subr.mxu0 %v3163_v39 }
 0x979   :  { %2613 = vmatpush3.msra.mxu0 %v3163_v39 }
 0xa32   :  { %v2586_v57 = vpop.f32.mrf.mxu0 }
 0xa33   :  { %v968_v58 = vadd.f32 %v2586_v57, %v2363_v55 }
 0xa34   :  { %v962_v59 = vpop.f32.mrf.mxu0 }
 0xa35   :  { %v974_v60 = vmul.f32 0.044715, %v968_v58  ;;  %v963_v61 = vadd.f32 %v2363_v55, %v962_v59  ;;  %v972_v12 = vmul.f32 0.5, %v968_v58  ;;  %v2387_v55 = vld [vmem:[%s3390_s4 + $0xc] ss:$0 sm:$0xff] }
 0xa37   :  { %v976_v63 = vmul.f32 %v974_v60, %v968_v58  ;;  %v973_v0 = vmul.f32 0.044715, %v963_v61  ;;  %v971_v10 = vmul.f32 0.5, %v963_v61 }
 0xa39   :  { %v978_v56 = vmul.f32 %v976_v63, %v968_v58  ;;  %v975_v35 = vmul.f32 %v973_v0, %v963_v61 }
 0xa3b   :  { %v980_v2 = vadd.f32 %v978_v56, %v968_v58  ;;  %v977_v3 = vmul.f32 %v975_v35, %v963_v61 }
 0xa3d   :  { %v982_v4 = vmul.f32 0.7978846, %v980_v2  ;;  %v979_v5 = vadd.f32 %v977_v3, %v963_v61 }
 0xa3f   :  { %2745 = vtanh.f32 %v982_v4  ;;  %v981_v6 = vmul.f32 0.7978846, %v979_v5 }
 0xa41   :  { %2747 = vtanh.f32 %v981_v6 }
 0xa4c   :  { %v2746_v7 = vpop.eup %2745 }
 0xa4d   :  { %v986_v9 = vadd.f32 1.0, %v2746_v7 }
 0xa4e   :  { %v2748_v8 = vpop.eup %2747 }
 0xa4f   :  { %v985_v11 = vadd.f32 1.0, %v2748_v8  ;;  %v988_v14 = vmul.f32 %v986_v9, %v972_v12 }
 0xa51   :  { %v987_v13 = vmul.f32 %v985_v11, %v971_v10 }
 0xa53   :  { %2603 = vmatprep.mubr.msk.f32.mxu1 %vm994_vm3, %v987_v13 }
 0xa54   :  { %2604 = vmatmul.mubr.msk.f32.vlgmr.msra.gmra.mxu1 %vm994_vm3, %v988_v14 }
 0xb14   :  { %v2605_v16 = vpop.f32.mrf.mxu1 }
 0xb15   :  { %v1073_v17 = vadd.f32 %v2605_v16, %v2366_v15 }
 0xb16   :  { %v1067_v18 = vpop.f32.mrf.mxu1 }
 0xb17   :  { %v1068_v19 = vadd.f32 %v2366_v15, %v1067_v18  ;;  %v1077_v20 = vadd.f32 %v1073_v17, %v884_v47 }
 0xb19   :  { %v1081_v21 = vsel %vm105_vm1, %v1077_v20, 0.0  ;;  %v1076_v22 = vadd.f32 %v1068_v19, %v3099_v45 }
 0xb1a   :  { %1082 = vadd.xlane.f32.xlu1 %v1081_v21 }
 0xb1b   :  { %v1078_v23 = vsel %vm105_vm1, %v1076_v22, 0.0 }
 0xb1c   :  { %1079 = vadd.xlane.f32.xlu0 %v1078_v23 }
 0xba3   :  { %v1083_v24 = vpop.xlane.xlu1 %1082 }
 0xba4   :  { %v1085_v53 = vmul.f32 0.03125, %v1083_v24 }
 0xba5   :  { %v1080_v49 = vpop.xlane.xlu0 %1079 }
 0xba6   :  { %v1087_v25 = vsub.f32 %v1077_v20, %v1085_v53  ;;  %v1084_v26 = vmul.f32 0.03125, %v1080_v49 }
 0xba8   :  { %v1086_v27 = vsub.f32 %v1076_v22, %v1084_v26  ;;  %v1089_v28 = vmul.f32 %v1087_v25, %v1087_v25 }
 0xbaa   :  { %v1093_v29 = vsel %vm105_vm1, %v1089_v28, 0.0  ;;  %v1088_v30 = vmul.f32 %v1086_v27, %v1086_v27 }
 0xbab   :  { %1094 = vadd.xlane.f32.xlu1 %v1093_v29 }
 0xbac   :  { %v1090_v31 = vsel %vm105_vm1, %v1088_v30, 0.0 }
 0xbad   :  { %1091 = vadd.xlane.f32.xlu0 %v1090_v31 }
 0xc34   :  { %v1095_v40 = vpop.xlane.xlu1 %1094 }
 0xc35   :  { %v1097_v41 = vmul.f32 0.03125, %v1095_v40 }
 0xc36   :  { %v1092_v42 = vpop.xlane.xlu0 %1091 }
 0xc37   :  { %v1099_v43 = vadd.f32 1e-12, %v1097_v41  ;;  %v1096_v44 = vmul.f32 0.03125, %v1092_v42 }
 0xc39   :  { %2749 = vrsqrt.f32 %v1099_v43  ;;  %v1098_v45 = vadd.f32 1e-12, %v1096_v44 }
 0xc3b   :  { %2751 = vrsqrt.f32 %v1098_v45 }
 0xc46   :  { %v2750_v46 = vpop.eup %2749 }
 0xc47   :  { %v1103_v47 = vmul.f32 %v2750_v46, %v1087_v25 }
 0xc48   :  { %v2752_v50 = vpop.eup %2751 }
 0xc49   :  { %v1102_v51 = vmul.f32 %v2752_v50, %v1086_v27  ;;  %v1110_v52 = vmul.f32 %v2369_v48, %v1103_v47 }
 0xc4b   :  { %v1109_v34 = vmul.f32 %v2369_v48, %v1102_v51  ;;  %v3177_v37 = vadd.f32 %v2370_v54, %v1110_v52 }
 0xc4d   :  { %v3175_v36 = vadd.f32 %v2370_v54, %v1109_v34 }
 0xc4f   :  { %2614 = vmatprep.mubr.msk.f32.mxu0 %vm105_vm1, %v3175_v36 }
 0xc50   :  { %2615 = vmatmul.mubr.msk.f32.vlgmr.msra.gmra.mxu0 %vm105_vm1, %v3177_v37 }
 0xd10   :  { %v2616_v57 = vpop.f32.mrf.mxu0 }
 0xd11   :  { %v3186_v58 = vadd.f32 %v2616_v57, %v2387_v55 }
 0xd12   :  { %v1213_v59 = vpop.f32.mrf.mxu0 }
 0xd13   :  { %v3188_v60 = vadd.f32 %v2387_v55, %v1213_v59  ;;  %1226 = vrot.lane.b32.xlu0 %v3186_v58, %s2820_s15 }
 0xd15   :  { %1224 = vrot.lane.b32.xlu1 %v3188_v60, %s2820_s15  ;;  %2621 = vmatprep.mubr.msk.f32.mxu0 %vm257_vm2, %v3188_v60 }
 0xd85   :  { %v1227_v61 = vpop.permute.xlu0 %1226 }
 0xd86   :  { %2617 = vmatprep.subr.msk.mxu0 %vm257_vm2, %v1227_v61 }
 0xd87   :  { %2618 = vmatpush3.xpose.msk.msra.mxu0 %vm257_vm2, %v1227_v61  ;;  %v1225_v63 = vpop.permute.xlu1 %1224 }
 0xd88   :  { %2619 = vmatprep.subr.msk.mxu0 %vm257_vm2, %v1225_v63 }
 0xd8b   :  { %2620 = vmatpush3.xpose.msk.msra.mxu0 %vm257_vm2, %v1225_v63 }
 0xd8e   :  { %2622 = vmatmul.mubr.msk.f32.vlgmr.msra.gmra.mxu0 %vm257_vm2, %v3186_v58 }
 0xe4e   :  { %v2623_v0 = vpop.f32.mrf.mxu0 }
 0xe4f   :  { %v1312_v56 = vmul.f32 0.25, %v2623_v0 }
 0xe50   :  { %v1302_v35 = vpop.f32.mrf.mxu0 }
 0xe51   :  { %v1311_v2 = vmul.f32 0.25, %v1302_v35  ;;  %v1314_v3 = vadd.f32 %v1312_v56, %v3015_v62 }
 0xe53   :  { %v1318_v4 = vsel %vm257_vm2, %v1314_v3, -inf  ;;  %v1313_v5 = vadd.f32 %v1311_v2, %v3020_v1 }
 0xe54   :  { %1319 = vmax.xlane.f32.xlu0 %v1318_v4 }
 0xe55   :  { %v1315_v6 = vsel %vm257_vm2, %v1313_v5, -inf }
 0xe56   :  { %1316 = vmax.xlane.f32.xlu1 %v1315_v6 }
 0xedd   :  { %v1320_v7 = vpop.xlane.xlu0 %1319 }
 0xede   :  { %v1322_v8 = vsub.f32 %v1314_v3, %v1320_v7  ;;  %v2406_v3 = vld [vmem:[%s3390_s4 + $0xd] ss:$0 sm:$0xff] }
 0xedf   :  { %v1317_v9 = vpop.xlane.xlu1 %1316 }
 0xee0   :  { %v1325_v10 = vmul.f32 1.442695, %v1322_v8  ;;  %v1321_v11 = vsub.f32 %v1313_v5, %v1317_v9 }
 0xee2   :  { %2753 = vpow2.f32 %v1325_v10  ;;  %v1323_v12 = vmul.f32 1.442695, %v1321_v11 }
 0xee4   :  { %2755 = vpow2.f32 %v1323_v12 }
 0xeef   :  { %v2754_v13 = vpop.eup %2753 }
 0xef0   :  { %v1330_v14 = vsel %vm257_vm2, %v2754_v13, 0.0 }
 0xef1   :  { %v2756_v15 = vpop.eup %2755  ;;  %1331 = vadd.xlane.f32.xlu1 %v1330_v14 }
 0xef2   :  { %v1327_v16 = vsel %vm257_vm2, %v2756_v15, 0.0 }
 0xef3   :  { %1328 = vadd.xlane.f32.xlu0 %v1327_v16 }
 0xf02   :  { %1337 = vrot.lane.b32.xlu1 %v3188_v60, %s2821_s3 }
 0xf06   :  { %1430 = vrot.lane.b32.xlu1 %v3186_v58, %s2822_s18 }
 0xf09   :  { %1339 = vrot.lane.b32.xlu0 %v3186_v58, %s2821_s3 }
 0xf0a   :  { %1428 = vrot.lane.b32.xlu1 %v3188_v60, %s2822_s18 }
 0xf0d   :  { %1424 = vrot.lane.b32.xlu0 %v3188_v60, %s2823_s23 }
 0xf0e   :  { %1426 = vrot.lane.b32.xlu1 %v3186_v58, %s2823_s23 }
 0xf7a   :  { %v1332_v17 = vpop.xlane.xlu1 %1331 }
 0xf7b   :  { %2757 = vrcp.f32 %v1332_v17 }
 0xf7c   :  { %v1329_v18 = vpop.xlane.xlu0 %1328 }
 0xf7d   :  { %2759 = vrcp.f32 %v1329_v18 }
 0xf7e   :  { %v1338_v19 = vpop.permute.xlu1 %1337 }
 0xf80   :  { %v1340_v20 = vpop.permute.xlu0 %1339 }
 0xf81   :  { %2624 = vmatprep.subr.mxu1 %v1340_v20 }
 0xf82   :  { %2625 = vmatpush3.msra.mxu1 %v1340_v20  ;;  %v1431_v21 = vpop.permute.xlu1 %1430 }
 0xf83   :  { %2626 = vmatprep.subr.mxu1 %v1338_v19 }
 0xf84   :  { %2627 = vmatpush3.msra.mxu1 %v1338_v19  ;;  %v1425_v49 = vpop.permute.xlu0 %1424 }
 0xf85   :  { %2631 = vmatprep.subr.msk.mxu1 %vm257_vm2, %v1431_v21 }
 0xf86   :  { %v1429_v25 = vpop.permute.xlu1 %1428 }
 0xf88   :  { %v2758_v22 = vpop.eup %2757 }
 0xf89   :  { %v1336_v53 = vmul.f32 %v2758_v22, %v2754_v13 }
 0xf8a   :  { %v2760_v23 = vpop.eup %2759  ;;  %v1427_v26 = vpop.permute.xlu1 %1426 }
 0xf8b   :  { %v1335_v24 = vmul.f32 %v2760_v23, %v2756_v15  ;;  %v2376_v23 = vld [vmem:[%s3391_s5 + $0x68] sm:$0xff] }
 0xf8d   :  { %2628 = vmatprep.mubr.msk.f32.mxu1 %vm257_vm2, %v1335_v24  ;;  %v2374_v24 = vld [vmem:[%s3391_s5 + $0x58] sm:$0xff] }
 0xf8e   :  { %2629 = vmatmul.mubr.msk.f32.vlgmr.msra.gmra.mxu1 %vm257_vm2, %v1336_v53  ;;  %v2372_v53 = vld [vmem:[%s3391_s5 + $0x48] sm:$0xff] }
 0xf8f   :  { %2632 = vmatpush3.xpose.msk.msra.mxu1 %vm257_vm2, %v1431_v21  ;;  %2635 = vmatprep.mubr.msk.f32.mxu1 %vm257_vm2, %v1425_v49 }
 0xf90   :  { %2633 = vmatprep.subr.msk.mxu1 %vm257_vm2, %v1429_v25 }
 0xf93   :  { %2634 = vmatpush3.xpose.msk.msra.mxu1 %vm257_vm2, %v1429_v25 }
 0xf96   :  { %2636 = vmatmul.mubr.msk.f32.vlgmr.msra.gmra.mxu1 %vm257_vm2, %v1427_v26 }
0x104e   :  { %v2630_v27 = vpop.f32.mrf.mxu1 }
0x1050   :  { %v1415_v28 = vpop.f32.mrf.mxu1 }
0x1051   :  { %2656 = vmatprep.mubr.msk.f32.mxu1 %vm257_vm2, %v1415_v28 }
0x1056   :  { %v2637_v29 = vpop.f32.mrf.mxu1 }
0x1057   :  { %v1516_v30 = vmul.f32 0.25, %v2637_v29 }
0x1058   :  { %v1506_v31 = vpop.f32.mrf.mxu1 }
0x1059   :  { %v1515_v40 = vmul.f32 0.25, %v1506_v31  ;;  %v1518_v41 = vadd.f32 %v1516_v30, %v3015_v62  ;;  %v2407_v31 = vld [vmem:[%s3390_s4 + $0xe] ss:$0 sm:$0xff] }
0x105b   :  { %v1522_v42 = vsel %vm257_vm2, %v1518_v41, -inf  ;;  %v1517_v43 = vadd.f32 %v1515_v40, %v3020_v1 }
0x105c   :  { %1523 = vmax.xlane.f32.xlu1 %v1522_v42 }
0x105d   :  { %v1519_v44 = vsel %vm257_vm2, %v1517_v43, -inf }
0x105e   :  { %1520 = vmax.xlane.f32.xlu0 %v1519_v44 }
0x106d   :  { %1541 = vrot.lane.b32.xlu1 %v3188_v60, %s2824_s10 }
0x1071   :  { %1632 = vrot.lane.b32.xlu1 %v3144_v32, %s2825_s11 }
0x1075   :  { %1721 = vrot.lane.b32.xlu1 %v3156_v38, %s2825_s11 }
0x1079   :  { %1719 = vrot.lane.b32.xlu1 %v3163_v39, %s2825_s11 }
0x10e5   :  { %v1524_v62 = vpop.xlane.xlu1 %1523 }
0x10e6   :  { %v1526_v45 = vsub.f32 %v1518_v41, %v1524_v62  ;;  %v2408_v41 = vld [vmem:[%s3390_s4 + $0xf] ss:$0 sm:$0xff] }
0x10e7   :  { %v1521_v46 = vpop.xlane.xlu0 %1520 }
0x10e8   :  { %v1529_v1 = vmul.f32 1.442695, %v1526_v45  ;;  %v1525_v47 = vsub.f32 %v1517_v43, %v1521_v46 }
0x10e9   :  { %v1542_v48 = vpop.permute.xlu1 %1541 }
0x10ea   :  { %2761 = vpow2.f32 %v1529_v1  ;;  %v1527_v50 = vmul.f32 1.442695, %v1525_v47  ;;  %v2386_v1 = vld [vmem:[%s3392_s6 + $0x78] sm:$0xff]  ;;  %v2385_v47 = vld [vmem:[%s3392_s6 + $0x70] sm:$0xff] }
0x10ec   :  { %2763 = vpow2.f32 %v1527_v50  ;;  %v2383_v50 = vld [vmem:[%s3392_s6 + $0x60] sm:$0xff] }
0x10ed   :  { %v1633_v51 = vpop.permute.xlu1 %1632 }
0x10f1   :  { %v1722_v52 = vpop.permute.xlu1 %1721 }
0x10f2   :  { %2652 = vmatprep.subr.mxu1 %v1722_v52 }
0x10f3   :  { %2653 = vmatpush3.msra.mxu1 %v1722_v52  ;;  %v2381_v52 = vld [vmem:[%s3392_s6 + $0x50] sm:$0xff] }
0x10f5   :  { %v1720_v32 = vpop.permute.xlu1 %1719 }
0x10f6   :  { %2654 = vmatprep.subr.mxu1 %v1720_v32 }
0x10f7   :  { %v2762_v34 = vpop.eup %2761  ;;  %2655 = vmatpush3.msra.mxu1 %v1720_v32  ;;  %v2380_v32 = vld [vmem:[%s3392_s6 + $0x48] sm:$0xff] }
0x10f8   :  { %2657 = vmatmul.mubr.msk.f32.vlgmr.msra.gmra.mxu1 %vm257_vm2, %v2630_v27  ;;  %v1534_v38 = vsel %vm257_vm2, %v2762_v34, 0.0  ;;  %2670 = vmatprep.subr.mxu1 %v2386_v1 }
0x10f9   :  { %v2764_v39 = vpop.eup %2763  ;;  %1535 = vadd.xlane.f32.xlu0 %v1534_v38  ;;  %2671 = vmatpush3.msra.mxu1 %v2386_v1  ;;  %v2409_v38 = vld [vmem:[%s3390_s4 + $0x10] ss:$0 sm:$0xff] }
0x10fa   :  { %v1531_v54 = vsel %vm257_vm2, %v2764_v39, 0.0  ;;  %2672 = vmatprep.subr.mxu1 %v2385_v47 }
0x10fb   :  { %2673 = vmatpush3.msra.mxu1 %v2385_v47 }
0x10fd   :  { %1532 = vadd.xlane.f32.xlu0 %v1531_v54 }
0x1113   :  { %1543 = vrot.lane.b32.xlu0 %v3186_v58, %s2824_s10  ;;  %s2828_s10 = smov [#allocation5]  }
0x1117   :  { %1630 = vrot.lane.b32.xlu0 %v3149_v33, %s2825_s11  ;;  %s2300_s11 = sshll.u32 %s2828_s10, 4  ;;  %s2301_s11 = int_to_ptr.vmem [resolvable:$true] %s2300_s11 }
0x1118   :  { %s2795_s26 = scalar_lea.vmem %s2301_s11, 32  ;;  %p2800_p6 = scmp.lt.s32.totalorder %s2301_s11, %s2301_s11 }
0x1119   :  { %p2796_p5 = scmp.ne.s32.totalorder %s2301_s11, %s2795_s26  ;;  %p2801_p7 = scmp.lt.s32.totalorder %s2795_s26, %s2795_s26 }
0x111b   :  { %p2802_p8 = por %p2801_p7, %p2800_p6 }
0x111d   :  { %p2803_p9 = pnand %p2802_p8, %p2796_p5 }
0x1182   :  { %v1536_v55 = vpop.xlane.xlu0 %1535 }
0x1183   :  { %2765 = vrcp.f32 %v1536_v55 }
0x1186   :  { %v1533_v57 = vpop.xlane.xlu0 %1532 }
0x1187   :  { %2767 = vrcp.f32 %v1533_v57 }
0x118a   :  { %v1544_v59 = vpop.permute.xlu0 %1543 }
0x118b   :  { %2638 = vmatprep.subr.mxu0 %v1544_v59 }
0x118c   :  { %2639 = vmatpush3.msra.mxu0 %v1544_v59 }
0x118d   :  { %2640 = vmatprep.subr.mxu0 %v1542_v48 }
0x118e   :  { %2641 = vmatpush3.msra.mxu0 %v1542_v48  ;;  %v1631_v58 = vpop.permute.xlu0 %1630  ;;  %v2384_v48 = vld [vmem:[%s3392_s6 + $0x68] sm:$0xff] }
0x118f   :  { %2645 = vmatprep.subr.mxu0 %v1633_v51  ;;  %2674 = vmatprep.subr.mxu1 %v2384_v48 }
0x1190   :  { %v2766_v60 = vpop.eup %2765  ;;  %2675 = vmatpush3.msra.mxu1 %v2384_v48  ;;  %v2415_v48 = vld [vmem:[%s3390_s4 + $0x12] ss:$0 sm:$0xff] }
0x1191   :  { %v1540_v0 = vmul.f32 %v2766_v60, %v2762_v34  ;;  %2676 = vmatprep.subr.mxu1 %v2383_v50  ;;  %v2379_v34 = vld [vmem:[%s3392_s6 + $0x40] sm:$0xff] }
0x1192   :  { %2677 = vmatpush3.msra.mxu1 %v2383_v50 }
0x1194   :  { %v2768_v61 = vpop.eup %2767 }
0x1195   :  { %v1539_v63 = vmul.f32 %v2768_v61, %v2764_v39 }
0x1197   :  { %2642 = vmatprep.mubr.msk.f32.mxu0 %vm257_vm2, %v1539_v63 }
0x1198   :  { %2643 = vmatmul.mubr.msk.f32.vlgmr.msra.gmra.mxu0 %vm257_vm2, %v1540_v0 }
0x1199   :  { %2646 = vmatpush3.msra.mxu0 %v1633_v51  ;;  %v2382_v51 = vld [vmem:[%s3392_s6 + $0x58] sm:$0xff] }
0x119a   :  { %2647 = vmatprep.subr.mxu0 %v1631_v58  ;;  %2678 = vmatprep.subr.mxu1 %v2382_v51 }
0x119b   :  { %2648 = vmatpush3.msra.mxu0 %v1631_v58  ;;  %2679 = vmatpush3.msra.mxu1 %v2382_v51 }
0x119c   :  { %2680 = vmatprep.subr.mxu1 %v2381_v52 }
0x119d   :  { %2681 = vmatpush3.msra.mxu1 %v2381_v52  ;;  %v2416_v52 = vld [vmem:[%s3390_s4 + $0x13] ss:$0 sm:$0xff] }
0x119e   :  { %2682 = vmatprep.subr.mxu1 %v2380_v32 }
0x119f   :  { %2683 = vmatpush3.msra.mxu1 %v2380_v32 }
0x11a0   :  { %2684 = vmatprep.subr.mxu1 %v2379_v34 }
0x11a1   :  { %2685 = vmatpush3.msra.mxu1 %v2379_v34 }
0x11b8   :  { %v2658_v35 = vpop.f32.mrf.mxu1 }
0x11ba   :  { %v1797_v5 = vpop.f32.mrf.mxu1 }
0x1258   :  { %v2644_v33 = vpop.f32.mrf.mxu0 }
0x125a   :  { %v1619_v56 = vpop.f32.mrf.mxu0 }
0x125b   :  { %2649 = vmatprep.mubr.msk.f32.mxu0 %vm257_vm2, %v1619_v56 }
0x125c   :  { %2650 = vmatmul.mubr.msk.f32.vlgmr.msra.gmra.mxu0 %vm257_vm2, %v2644_v33 }
0x131c   :  { %v2651_v2 = vpop.f32.mrf.mxu0 }
0x131d   :  { %v1803_v4 = vadd.f32 %v2658_v35, %v2651_v2 }
0x131e   :  { %v1708_v6 = vpop.f32.mrf.mxu0 }
0x131f   :  { %v1812_v7 = vadd.f32 %v2406_v3, %v1803_v4  ;;  %v1798_v8 = vadd.f32 %v1797_v5, %v1708_v6 }
0x1321   :  { %v1811_v9 = vadd.f32 %v2406_v3, %v1798_v8  ;;  %v1814_v10 = vadd.f32 %v1812_v7, %v3177_v37 }
0x1323   :  { %v1818_v11 = vsel %vm105_vm1, %v1814_v10, 0.0  ;;  %v1813_v12 = vadd.f32 %v1811_v9, %v3175_v36  ;;  %v2378_v36 = vld [vmem:[%s3391_s5 + $0x78] sm:$0xff] }
0x1324   :  { %1819 = vadd.xlane.f32.xlu1 %v1818_v11  ;;  %2659 = vmatprep.subr.mxu0 %v2378_v36  ;;  %v2412_v11 = vld [vmem:[%s3390_s4 + $0x11] ss:$0 sm:$0xff] }
0x1325   :  { %v1815_v13 = vsel %vm105_vm1, %v1813_v12, 0.0  ;;  %2660 = vmatpush3.msra.mxu0 %v2378_v36 }
0x1326   :  { %1816 = vadd.xlane.f32.xlu0 %v1815_v13  ;;  %2661 = vmatprep.subr.mxu0 %v2376_v23 }
0x1327   :  { %2662 = vmatpush3.msra.mxu0 %v2376_v23 }
0x1328   :  { %2663 = vmatprep.subr.mxu0 %v2374_v24 }
0x1329   :  { %2664 = vmatpush3.msra.mxu0 %v2374_v24 }
0x132a   :  { %2665 = vmatprep.subr.mxu0 %v2372_v53 }
0x132b   :  { %2666 = vmatpush3.msra.mxu0 %v2372_v53 }
0x13ad   :  { %v1820_v14 = vpop.xlane.xlu1 %1819 }
0x13ae   :  { %v1822_v15 = vmul.f32 0.03125, %v1820_v14 }
0x13af   :  { %v1817_v16 = vpop.xlane.xlu0 %1816 }
0x13b0   :  { %v1821_v17 = vmul.f32 0.03125, %v1817_v16  ;;  %v1824_v18 = vsub.f32 %v1814_v10, %v1822_v15 }
0x13b2   :  { %v1823_v19 = vsub.f32 %v1813_v12, %v1821_v17  ;;  %v1826_v22 = vmul.f32 %v1824_v18, %v1824_v18 }
0x13b4   :  { %v1825_v20 = vmul.f32 %v1823_v19, %v1823_v19  ;;  %v1830_v37 = vsel %vm105_vm1, %v1826_v22, 0.0 }
0x13b6   :  { %v1827_v21 = vsel %vm105_vm1, %v1825_v20, 0.0 }
0x13b7   :  { %1828 = vadd.xlane.f32.xlu0 %v1827_v21 }
0x13bb   :  { %1831 = vadd.xlane.f32.xlu0 %v1830_v37 }
0x1440   :  { %v1829_v49 = vpop.xlane.xlu0 %1828 }
0x1441   :  { %v1833_v25 = vmul.f32 0.03125, %v1829_v49 }
0x1443   :  { %v1835_v26 = vadd.f32 1e-12, %v1833_v25 }
0x1444   :  { %v1832_v27 = vpop.xlane.xlu0 %1831 }
0x1445   :  { %2769 = vrsqrt.f32 %v1835_v26  ;;  %v1834_v28 = vmul.f32 0.03125, %v1832_v27  ;;  %v2095_v26 = vld [vmem:[%s3393_s7 + $0x30] sm:$0xff]  ;;  %v2826_v27 = vmov 0.0  }
0x1446   :  { %2689 = vmatprep.subr.mxu0 %v2826_v27 }
0x1447   :  { %v1836_v29 = vadd.f32 1e-12, %v1834_v28  ;;  %v2094_v28 = vld [vmem:[%s3393_s7 + $0x20] sm:$0xff] }
0x1449   :  { %2771 = vrsqrt.f32 %v1836_v29  ;;  %v2093_v29 = vld [vmem:[%s3393_s7 + $0x10] sm:$0xff] }
0x1452   :  { %v2770_v30 = vpop.eup %2769 }
0x1453   :  { %v1839_v40 = vmul.f32 %v2770_v30, %v1823_v19  ;;  %v2092_v30 = vld [vmem:[%s3393_s7] sm:$0xff] }
0x1455   :  { %v1846_v42 = vmul.f32 %v2407_v31, %v1839_v40  ;;  %v2098_v40 = vld [vmem:[%s3393_s7 + $0x28] sm:$0xff] }
0x1456   :  { %v2772_v43 = vpop.eup %2771 }
0x1457   :  { %v1840_v44 = vmul.f32 %v2772_v43, %v1824_v18  ;;  %v3279_v62 = vadd.f32 %v2408_v41, %v1846_v42  ;;  %v2096_v42 = vld [vmem:[%s3393_s7 + $0x8] sm:$0xff] }
0x1459   :  { %v1847_v45 = vmul.f32 %v2407_v31, %v1840_v44  ;;  %2667 = vmatprep.mubr.msk.f32.mxu0 %vm105_vm1, %v3279_v62  ;;  %v2099_v31 = vld [vmem:[%s3393_s7 + $0x38] sm:$0xff] }
0x145b   :  { %v1854_v46 = vadd.f32 %v2408_v41, %v1847_v45  ;;  %v2097_v41 = vld [vmem:[%s3393_s7 + $0x18] sm:$0xff] }
0x145d   :  { %2668 = vmatmul.mubr.msk.f32.vlgmr.msra.gmra.mxu0 %vm105_vm1, %v1854_v46 }
0x145e   :  { %2697 = vmatprep.mubr.msk.f32.mxu0 %vm2827_vm4, %v2826_v27  ;;  %2690 = vmatpush3.msra.mxu0 %v2095_v26 }
0x145f   :  { %2691 = vmatprep.subr.mxu0 %v2826_v27 }
0x1460   :  { %2692 = vmatpush3.msra.mxu0 %v2094_v28 }
0x1461   :  { %2693 = vmatprep.subr.mxu0 %v2826_v27 }
0x1462   :  { %2694 = vmatpush3.msra.mxu0 %v2093_v29 }
0x1463   :  { %2695 = vmatprep.subr.mxu0 %v2826_v27 }
0x1464   :  { %2696 = vmatpush3.msra.mxu0 %v2092_v30 }
0x1465   :  { %2700 = vmatprep.subr.mxu0 %v2826_v27 }
0x151d   :  { %v2669_v39 = vpop.f32.mrf.mxu0 }
0x151e   :  { %v1938_v54 = vadd.f32 %v2669_v39, %v2409_v38 }
0x151f   :  { %v1932_v55 = vpop.f32.mrf.mxu0 }
0x1520   :  { %v1944_v57 = vmul.f32 0.044715, %v1938_v54  ;;  %v1933_v59 = vadd.f32 %v2409_v38, %v1932_v55  ;;  %v1942_v8 = vmul.f32 0.5, %v1938_v54 }
0x1522   :  { %v1946_v60 = vmul.f32 %v1944_v57, %v1938_v54  ;;  %v1943_v61 = vmul.f32 0.044715, %v1933_v59  ;;  %v1941_v6 = vmul.f32 0.5, %v1933_v59 }
0x1524   :  { %v1948_v63 = vmul.f32 %v1946_v60, %v1938_v54  ;;  %v1945_v0 = vmul.f32 %v1943_v61, %v1933_v59 }
0x1526   :  { %v1950_v58 = vadd.f32 %v1948_v63, %v1938_v54  ;;  %v1947_v33 = vmul.f32 %v1945_v0, %v1933_v59 }
0x1528   :  { %v1952_v56 = vmul.f32 0.7978846, %v1950_v58  ;;  %v1949_v35 = vadd.f32 %v1947_v33, %v1933_v59 }
0x152a   :  { %2773 = vtanh.f32 %v1952_v56  ;;  %v1951_v2 = vmul.f32 0.7978846, %v1949_v35 }
0x152c   :  { %2775 = vtanh.f32 %v1951_v2 }
0x1537   :  { %v2774_v3 = vpop.eup %2773 }
0x1538   :  { %v1956_v5 = vadd.f32 1.0, %v2774_v3 }
0x1539   :  { %v2776_v4 = vpop.eup %2775 }
0x153a   :  { %v1955_v7 = vadd.f32 1.0, %v2776_v4  ;;  %v1958_v10 = vmul.f32 %v1956_v5, %v1942_v8  ;;  %v2417_v5 = vld [vmem:[%s3390_s4 + $0x2] ss:$0 sm:$0xff] }
0x153c   :  { %v1957_v9 = vmul.f32 %v1955_v7, %v1941_v6 }
0x153e   :  { %2686 = vmatprep.mubr.msk.f32.mxu1 %vm994_vm3, %v1957_v9 }
0x153f   :  { %2687 = vmatmul.mubr.msk.f32.vlgmr.msra.gmra.mxu1 %vm994_vm3, %v1958_v10  ;;  %v2419_v10 = vld [vmem:[%s3390_s4 + $0x3] ss:$0 sm:$0xff] }
0x15ff   :  { %v2688_v12 = vpop.f32.mrf.mxu1 }
0x1600   :  { %v2042_v13 = vadd.f32 %v2688_v12, %v2412_v11 }
0x1601   :  { %v2036_v14 = vpop.f32.mrf.mxu1 }
0x1602   :  { %v2037_v15 = vadd.f32 %v2412_v11, %v2036_v14  ;;  %v2046_v16 = vadd.f32 %v2042_v13, %v1854_v46 }
0x1604   :  { %v2050_v17 = vsel %vm105_vm1, %v2046_v16, 0.0  ;;  %v2045_v18 = vadd.f32 %v2037_v15, %v3279_v62 }
0x1605   :  { %2051 = vadd.xlane.f32.xlu0 %v2050_v17 }
0x1606   :  { %v2047_v19 = vsel %vm105_vm1, %v2045_v18, 0.0 }
0x1607   :  { %2048 = vadd.xlane.f32.xlu1 %v2047_v19 }
0x168e   :  { %v2052_v20 = vpop.xlane.xlu0 %2051 }
0x168f   :  { %v2054_v21 = vmul.f32 0.03125, %v2052_v20 }
0x1690   :  { %v2049_v22 = vpop.xlane.xlu1 %2048 }
0x1691   :  { %v2056_v37 = vsub.f32 %v2046_v16, %v2054_v21  ;;  %v2053_v36 = vmul.f32 0.03125, %v2049_v22 }
0x1693   :  { %v2055_v23 = vsub.f32 %v2045_v18, %v2053_v36  ;;  %v2058_v24 = vmul.f32 %v2056_v37, %v2056_v37 }
0x1695   :  { %v2062_v53 = vsel %vm105_vm1, %v2058_v24, 0.0  ;;  %v2057_v49 = vmul.f32 %v2055_v23, %v2055_v23 }
0x1696   :  { %2063 = vadd.xlane.f32.xlu0 %v2062_v53 }
0x1697   :  { %v2059_v25 = vsel %vm105_vm1, %v2057_v49, 0.0 }
0x1698   :  { %2060 = vadd.xlane.f32.xlu1 %v2059_v25 }
0x16a9   :  { %2206 = vrot.lane.b32.xlu1 %v2099_v31, %s2820_s15 }
0x16ac   :  { %2204 = vrot.lane.b32.xlu0 %v2095_v26, %s2820_s15 }
0x16ad   :  { %2200 = vrot.lane.b32.xlu1 %v2094_v28, %s2820_s15 }
0x16b0   :  { %2196 = vrot.lane.b32.xlu0 %v2093_v29, %s2820_s15 }
0x16b1   :  { %2202 = vrot.lane.b32.xlu1 %v2098_v40, %s2820_s15 }
0x16b4   :  { %2192 = vrot.lane.b32.xlu0 %v2092_v30, %s2820_s15 }
0x16b5   :  { %2198 = vrot.lane.b32.xlu1 %v2097_v41, %s2820_s15 }
0x16b9   :  { %2194 = vrot.lane.b32.xlu1 %v2096_v42, %s2820_s15 }
0x171f   :  { %v2064_v43 = vpop.xlane.xlu0 %2063 }
0x1720   :  { %v2066_v44 = vmul.f32 0.03125, %v2064_v43 }
0x1721   :  { %v2061_v62 = vpop.xlane.xlu1 %2060 }
0x1722   :  { %v2068_v45 = vadd.f32 1e-12, %v2066_v44  ;;  %v2065_v46 = vmul.f32 0.03125, %v2061_v62 }
0x1723   :  { %v2205_v54 = vpop.permute.xlu0 %2204 }
0x1724   :  { %2777 = vrsqrt.f32 %v2068_v45  ;;  %v2067_v1 = vadd.f32 1e-12, %v2065_v46 }
0x1725   :  { %v2207_v59 = vpop.permute.xlu1 %2206 }
0x1726   :  { %2779 = vrsqrt.f32 %v2067_v1  ;;  %v2212_v60 = vsel %vm2208_vm5, %v2205_v54, %v2207_v59 }
0x1727   :  { %v2197_v33 = vpop.permute.xlu0 %2196 }
0x1729   :  { %v2201_v63 = vpop.permute.xlu1 %2200 }
0x172b   :  { %v2193_v2 = vpop.permute.xlu0 %2192 }
0x172d   :  { %v2203_v0 = vpop.permute.xlu1 %2202 }
0x172e   :  { %v2211_v58 = vsel %vm2208_vm5, %v2201_v63, %v2203_v0 }
0x1731   :  { %v2778_v47 = vpop.eup %2777  ;;  %v2199_v56 = vpop.permute.xlu1 %2198 }
0x1732   :  { %v2072_v50 = vmul.f32 %v2778_v47, %v2056_v37  ;;  %v2210_v35 = vsel %vm2208_vm5, %v2197_v33, %v2199_v56 }
0x1733   :  { %v2780_v51 = vpop.eup %2779 }
0x1734   :  { %v2071_v32 = vmul.f32 %v2780_v51, %v2055_v23  ;;  %v2079_v34 = vmul.f32 %v2415_v48, %v2072_v50 }
0x1735   :  { %v2195_v3 = vpop.permute.xlu1 %2194 }
0x1736   :  { %v2078_v38 = vmul.f32 %v2415_v48, %v2071_v32  ;;  %v2086_v39 = vadd.f32 %v2416_v52, %v2079_v34  ;;  %v2209_v4 = vsel %vm2208_vm5, %v2193_v2, %v2195_v3 }
0x1738   :  { %v2085_v55 = vadd.f32 %v2416_v52, %v2078_v38  ;;  %v2088_v57 = vrot.slane %v2086_v39, 7 }
0x173a   :  { %v2091_v61 = vsel %vm2090_vm6, %v2085_v55, %v2088_v57 }
0x173b   :  { %2698 = vmatmul.mubr.msk.f32.vlgmr.msra.gmra.mxu0 %vm105_vm1, %v2091_v61 }
0x173c   :  { %2701 = vmatpush3.msra.mxu0 %v2212_v60  ;;  %2708 = vmatprep.mubr.msk.f32.mxu0 %vm2827_vm4, %v2826_v27 }
0x173d   :  { %2702 = vmatprep.subr.mxu0 %v2826_v27 }
0x173e   :  { %2703 = vmatpush3.msra.mxu0 %v2211_v58 }
0x173f   :  { %2704 = vmatprep.subr.mxu0 %v2826_v27 }
0x1740   :  { %2705 = vmatpush3.msra.mxu0 %v2210_v35 }
0x1741   :  { %2706 = vmatprep.subr.mxu0 %v2826_v27 }
0x1742   :  { %2707 = vmatpush3.msra.mxu0 %v2209_v4 }
0x17fb   :  { %v2174_v6 = vpop.f32.mrf.mxu0 }
0x17fc   :  { %v2175_v7 = vadd.f32 %v2417_v5, %v2174_v6 }
0x17fd   :  { %v2699_v8 = vpop.f32.mrf.mxu0 }
0x17fe   :  { %2781 = vtanh.f32 %v2175_v7 }
0x180b   :  { %v2782_v9 = vpop.eup %2781 }
0x180c   :  { %2709 = vmatmul.mubr.msk.f32.vlgmr.msra.gmra.mxu0 %vm105_vm1, %v2782_v9 }
0x18cc   :  { %v2286_v11 = vpop.f32.mrf.mxu0 }
0x18cd   :  { %v2287_v12 = vadd.f32 %v2419_v10, %v2286_v11 }
0x18ce   :  { %v2710_v13 = vpop.f32.mrf.mxu0 }
0x18cf   :  { %v2291_v14 = vmul.f32 0.1, %v2287_v12  ;;  %vm2290_vm7 = vcmp.ge.f32.partialorder %v2287_v12, 0.0 }
0x18d1   :  { %v2292_v15 = vsel %vm2290_vm7, %v2287_v12, %v2291_v14 }
0x18d2   :  { %2293 = vst [vmem:[#allocation5] sm:$0x3] %v2292_v15 }
0x18d3   :  { %2806 = shalt.err (!%p2803_p9)
}
0x18d4   :  { %2303 = dma.vmem_to_hbm [thread:$0]  %s2301_s11, 32, %s3394_s8, [#allocation6]  }
0x18d5   :  { %2817 = dma.done.wait [#allocation6], 32  }
0x18d6   :  { %2818 = vsyncadd [#allocation6], 4294967264 }
0x18d7   :  { %2307 = vsyncpa [#allocation6], 1 }

</bundles_post_ra>
